<compile_context>
chip_gen: v6e
topology: v6e:2x2x1
jax: 0.10.0
libtpu: 0.0.40
codegen_flags: <defaults>
</compile_context>

<pallas_src>
import math
from functools import partial

import jax
import jax.numpy as jnp
from jax import lax
from jax.experimental import pallas as pl
from jax.experimental.pallas import tpu as pltpu

INPUT_DIM = 4
HIDDEN = 32
NUM_HEADS = 4
HEAD_DIM = HIDDEN // NUM_HEADS
NUM_LAYERS = 2
OUT_DIM = 1
EPS = 1e-5            # nn.LayerNorm default
NEG_INF = -1e30       # batch-mask value (exp(NEG_INF - max) == 0 exactly in f32)


# ----------------------------- fused Pallas kernel --------------------------------

def _fused_forward_kernel(B, S,
                          xT_ref, mask_ref, emb_wT_ref, emb_bT_ref,
                          w_ref, vec_ref, outw_ref, outb_ref, o_ref):
    """Entire forward pass at one grid point; everything VMEM-resident.

    Activations live in "transposed space": (HIDDEN, B*S).

    xT_ref:   (INPUT_DIM, B*S)
    mask_ref: (B*S, B*S)            0 on same-batch blocks, NEG_INF elsewhere
    emb_wT:   (HIDDEN, INPUT_DIM),  emb_bT: (HIDDEN, 1)
    w_ref:    (L, 4*HIDDEN, HIDDEN) row blocks = [Wq^T*scale | Wk^T | Wv^T | Wo^T]
    vec_ref:  (L, 6*HIDDEN, 1)      row blocks = [bq*scale, bk, bv, bo, gamma, beta]
    outw:     (HIDDEN, 1)           outb: (1, 1)        (OUT_DIM == 1)
    o_ref:    (1, B*S)              lane-dense output row
    """
    H = HIDDEN
    mask = mask_ref[...]                                              # (BS, BS)

    # ---- input embedding: hT = Wemb^T @ x^T + b ----
    hT = (jnp.dot(emb_wT_ref[...], xT_ref[...], preferred_element_type=jnp.float32)
          + emb_bT_ref[...])                                          # (H, BS)

    # ---- [MHA -> dropout(identity) -> LayerNorm] x NUM_LAYERS (static unroll) ----
    for layer in range(NUM_LAYERS):
        w = w_ref[layer]                                              # (4H, H)
        vec = vec_ref[layer]                                          # (6H, 1)
        wqT, wkT = w[0 * H:1 * H, :], w[1 * H:2 * H, :]               # sublane-aligned slices
        wvT, woT = w[2 * H:3 * H, :], w[3 * H:4 * H, :]
        bqT, bkT, bvT = vec[0 * H:1 * H], vec[1 * H:2 * H], vec[2 * H:3 * H]
        boT, gammaT, betaT = vec[3 * H:4 * H], vec[4 * H:5 * H], vec[5 * H:6 * H]

        # projections: three aligned (H,H)@(H,BS) matmuls; 1/sqrt(hd) already in wqT/bqT
        qT = jnp.dot(wqT, hT, preferred_element_type=jnp.float32) + bqT   # (H, BS)
        kT = jnp.dot(wkT, hT, preferred_element_type=jnp.float32) + bkT
        vT = jnp.dot(wvT, hT, preferred_element_type=jnp.float32) + bvT

        # per-head attention, batched over B via the block-diagonal mask.
        # Head slices are sublane slices at multiples of HEAD_DIM == 8 -> tile-aligned.
        head_outs = []
        for hh in range(NUM_HEADS):
            r0 = hh * HEAD_DIM
            qhT = qT[r0:r0 + HEAD_DIM, :]                             # (hd, BS)
            khT = kT[r0:r0 + HEAD_DIM, :]
            vhT = vT[r0:r0 + HEAD_DIM, :]

            # scores over ALL batches at once; k is already in MXU-friendly (hd, BS) form
            s = jnp.dot(qhT.T, khT, preferred_element_type=jnp.float32) + mask   # (BS, BS)
            m = jnp.max(s, axis=-1, keepdims=True)
            p = jnp.exp(s - m)
            p = p * pl.reciprocal(jnp.sum(p, axis=-1, keepdims=True), approx=True)
            # o_hT[d, i] = sum_j vhT[d, j] * p[i, j]   (contract last dims -> no transpose)
            o_hT = lax.dot_general(vhT, p, (((1,), (1,)), ((), ())),
                                   preferred_element_type=jnp.float32)           # (hd, BS)
            head_outs.append(o_hT)

        # tile-aligned sublane concat, then ONE Wo matmul per layer
        attnT = jnp.concatenate(head_outs, axis=0)                    # (H, BS)
        attnT = jnp.dot(woT, attnT, preferred_element_type=jnp.float32) + boT

        # dropout == identity (eval); LayerNorm over the hidden dim (sublane axis);
        # NO residual connection (matches the reference module).
        mu = jnp.mean(attnT, axis=0, keepdims=True)                   # (1, BS)
        var = jnp.mean((attnT - mu) ** 2, axis=0, keepdims=True)
        hT = (attnT - mu) * lax.rsqrt(var + EPS) * gammaT + betaT

    # ---- output projection (OUT_DIM == 1): lane-dense (1, BS) row store ----
    o_ref[...] = (jnp.sum(hT * outw_ref[...], axis=0, keepdims=True)
                  + outb_ref[...])


# ------------------------------ wrappers ---------------------------------

def pack_params(params):
    """Pack weights into transposed / sublane-aligned operands (done once)."""
    scale = 1.0 / math.sqrt(HEAD_DIM)
    w_blocks, vec_blocks = [], []
    for (wq, wk, wv, bq, bk, bv, wo, bo, g, beta) in params["layers"]:
        w_blocks.append(jnp.concatenate([(wq * scale).T, wk.T, wv.T, wo.T], axis=0))   # (4H, H)
        vec_blocks.append(jnp.concatenate([bq * scale, bk, bv, bo, g, beta])
                          .reshape(6 * HIDDEN, 1))                                      # (6H, 1)
    return dict(
        emb_wT=params["emb_w"].T,                                     # (H, Din)
        emb_bT=params["emb_b"].reshape(HIDDEN, 1),                    # (H, 1)
        w=jnp.stack(w_blocks),                                        # (L, 4H, H)
        vecs=jnp.stack(vec_blocks),                                   # (L, 6H, 1)
        out_w=params["out_w"].reshape(HIDDEN, OUT_DIM),               # (H, 1)
        out_b=params["out_b"].reshape(1, OUT_DIM),                    # (1, 1)
    )


def efficient_informer_forward(x, packed):
    B, S, Din = x.shape
    BS = B * S
    xT = x.reshape(BS, Din).T                                         # (Din, BS) tiny XLA transpose

    # block-diagonal batch mask, built outside the kernel (constant per shape)
    tok = jnp.arange(BS, dtype=jnp.int32) // S
    mask = jnp.where(tok[:, None] == tok[None, :], 0.0, NEG_INF).astype(jnp.float32)

    # advisory cost estimate for XLA scheduling around this tiny custom call
    flops = (2 * BS * Din * HIDDEN
             + NUM_LAYERS * (8 * HIDDEN * HIDDEN * BS + 4 * HIDDEN * BS * BS)
             + 2 * BS * HIDDEN * OUT_DIM)
    transcendentals = NUM_LAYERS * NUM_HEADS * BS * (BS + 1)
    bytes_accessed = 4 * (xT.size + mask.size + packed["emb_wT"].size + packed["emb_bT"].size
                          + packed["w"].size + packed["vecs"].size
                          + packed["out_w"].size + packed["out_b"].size + BS * OUT_DIM)

    vmem_spec = pl.BlockSpec(memory_space=pltpu.MemorySpace.VMEM)
    out = pl.pallas_call(
        partial(_fused_forward_kernel, B, S),
        out_shape=jax.ShapeDtypeStruct((1, BS), jnp.float32),
        in_specs=[vmem_spec] * 8,
        out_specs=vmem_spec,
        cost_estimate=pl.CostEstimate(flops=flops, transcendentals=transcendentals,
                                      bytes_accessed=bytes_accessed),
    )(xT, mask, packed["emb_wT"], packed["emb_bT"], packed["w"], packed["vecs"],
      packed["out_w"], packed["out_b"])
    return out.T.reshape(B, S, OUT_DIM)


def init_params(key):
    ks = jax.random.split(key, 4 + NUM_LAYERS * 8)

    def w(k, shape, scale=0.1):
        return (scale * jax.random.normal(k, shape)).astype(jnp.float32)

    params = {
        "emb_w": w(ks[0], (INPUT_DIM, HIDDEN)),
        "emb_b": w(ks[1], (HIDDEN,)),
        "out_w": w(ks[2], (HIDDEN, OUT_DIM)),
        "out_b": w(ks[3], (OUT_DIM,)),
        "layers": [],
    }
    idx = 4
    for _ in range(NUM_LAYERS):
        wq = w(ks[idx + 0], (HIDDEN, HIDDEN))
        wk = w(ks[idx + 1], (HIDDEN, HIDDEN))
        wv = w(ks[idx + 2], (HIDDEN, HIDDEN))
        bq = w(ks[idx + 3], (HIDDEN,))
        bk = w(ks[idx + 4], (HIDDEN,))
        bv = w(ks[idx + 5], (HIDDEN,))
        wo = w(ks[idx + 6], (HIDDEN, HIDDEN))
        bo = w(ks[idx + 7], (HIDDEN,))
        gamma = jnp.ones((HIDDEN,), jnp.float32)   # LayerNorm default init
        beta = jnp.zeros((HIDDEN,), jnp.float32)
        params["layers"].append((wq, wk, wv, bq, bk, bv, wo, bo, gamma, beta))
        idx += 8
    return params


# --------------------------- pure-JAX reference --------------------------------

def reference_forward(x, params):
    B, S, _ = x.shape
    hd = HEAD_DIM
    h = x @ params["emb_w"] + params["emb_b"]
    for (wq, wk, wv, bq, bk, bv, wo, bo, g, beta) in params["layers"]:
        q = (h @ wq + bq).reshape(B, S, NUM_HEADS, hd).transpose(0, 2, 1, 3)
        k = (h @ wk + bk).reshape(B, S, NUM_HEADS, hd).transpose(0, 2, 1, 3)
        v = (h @ wv + bv).reshape(B, S, NUM_HEADS, hd).transpose(0, 2, 1, 3)
        s = jnp.einsum("bhqd,bhkd->bhqk", q, k) / math.sqrt(hd)
        p = jax.nn.softmax(s, axis=-1)
        o = jnp.einsum("bhqk,bhkd->bhqd", p, v).transpose(0, 2, 1, 3).reshape(B, S, HIDDEN)
        o = o @ wo + bo
        mu = o.mean(-1, keepdims=True)
        var = ((o - mu) ** 2).mean(-1, keepdims=True)
        h = (o - mu) / jnp.sqrt(var + EPS) * g + beta
    return h @ params["out_w"] + params["out_b"]


# ----------------------------------- main --------------------------------------

if __name__ == "__main__":
    key = jax.random.PRNGKey(0)
    k_x, k_p = jax.random.split(key)
    x = jax.random.normal(k_x, (2, 8, INPUT_DIM), dtype=jnp.float32)  # (B=2, S=8, D_in=4)
    params = init_params(k_p)
    packed = pack_params(params)

    y = efficient_informer_forward(x, packed)
    y = jax.block_until_ready(y)

    y_ref = reference_forward(x, params)
    assert y.shape == (2, 8, OUT_DIM)
    # tolerance 1e-3 to accommodate the EUP approximate reciprocal in the softmax denom
    assert jnp.allclose(y, y_ref, atol=1e-3, rtol=1e-3), "mismatch vs JAX reference"

    print("KERNEL_OK")
</pallas_src>

<mosaic_0001>
module attributes {stable_mosaic.version = 11 : i64} {
  func.func @_fused_forward_kernel(%arg0: memref<4x16xf32, #tpu.memory_space<vmem>>, %arg1: memref<16x16xf32, #tpu.memory_space<vmem>>, %arg2: memref<32x4xf32, #tpu.memory_space<vmem>>, %arg3: memref<32x1xf32, #tpu.memory_space<vmem>>, %arg4: memref<2x128x32xf32, #tpu.memory_space<vmem>>, %arg5: memref<2x192x1xf32, #tpu.memory_space<vmem>>, %arg6: memref<32x1xf32, #tpu.memory_space<vmem>>, %arg7: memref<1x1xf32, #tpu.memory_space<vmem>>, %arg8: memref<1x16xf32, #tpu.memory_space<vmem>>) attributes {dimension_semantics = [], scalar_prefetch = 0 : i64, scratch_operands = 0 : i64, tpu.core_type = #tpu.core_type<tc>} {
    %c0 = arith.constant 0 : index
    %c0_0 = arith.constant 0 : index
    %0 = vector.load %arg1[%c0, %c0_0] : memref<16x16xf32, #tpu.memory_space<vmem>>, vector<16x16xf32>
    %c0_1 = arith.constant 0 : index
    %c0_2 = arith.constant 0 : index
    %1 = vector.load %arg2[%c0_1, %c0_2] : memref<32x4xf32, #tpu.memory_space<vmem>>, vector<32x4xf32>
    %c0_3 = arith.constant 0 : index
    %c0_4 = arith.constant 0 : index
    %2 = vector.load %arg0[%c0_3, %c0_4] : memref<4x16xf32, #tpu.memory_space<vmem>>, vector<4x16xf32>
    %cst = arith.constant dense<0.000000e+00> : vector<32x16xf32>
    %3 = tpu.matmul %1, %2, %cst {dimension_numbers = #tpu.dot_dimension_numbers<[1], [0], [0], [1], [0, 0, 1, 1], [], []>} : vector<32x4xf32>, vector<4x16xf32>, vector<32x16xf32> -> vector<32x16xf32>
    %c0_5 = arith.constant 0 : index
    %c0_6 = arith.constant 0 : index
    %4 = vector.load %arg3[%c0_5, %c0_6] : memref<32x1xf32, #tpu.memory_space<vmem>>, vector<32x1xf32>
    %5 = vector.broadcast %4 : vector<32x1xf32> to vector<32x16xf32>
    %6 = arith.addf %3, %5 : vector<32x16xf32>
    %c0_7 = arith.constant 0 : index
    %c0_8 = arith.constant 0 : index
    %c0_9 = arith.constant 0 : index
    %7 = vector.load %arg4[%c0_7, %c0_8, %c0_9] : memref<2x128x32xf32, #tpu.memory_space<vmem>>, vector<1x128x32xf32>
    %8 = vector.shape_cast %7 : vector<1x128x32xf32> to vector<128x32xf32>
    %c0_10 = arith.constant 0 : index
    %c0_11 = arith.constant 0 : index
    %c0_12 = arith.constant 0 : index
    %9 = vector.load %arg5[%c0_10, %c0_11, %c0_12] : memref<2x192x1xf32, #tpu.memory_space<vmem>>, vector<1x192x1xf32>
    %10 = vector.shape_cast %9 : vector<1x192x1xf32> to vector<192x1xf32>
    %11 = vector.extract_strided_slice %8 {offsets = [0, 0], sizes = [32, 32], strides = [1, 1]} : vector<128x32xf32> to vector<32x32xf32>
    %12 = vector.extract_strided_slice %8 {offsets = [32, 0], sizes = [32, 32], strides = [1, 1]} : vector<128x32xf32> to vector<32x32xf32>
    %13 = vector.extract_strided_slice %8 {offsets = [64, 0], sizes = [32, 32], strides = [1, 1]} : vector<128x32xf32> to vector<32x32xf32>
    %14 = vector.extract_strided_slice %8 {offsets = [96, 0], sizes = [32, 32], strides = [1, 1]} : vector<128x32xf32> to vector<32x32xf32>
    %15 = vector.extract_strided_slice %10 {offsets = [0, 0], sizes = [32, 1], strides = [1, 1]} : vector<192x1xf32> to vector<32x1xf32>
    %16 = vector.extract_strided_slice %10 {offsets = [32, 0], sizes = [32, 1], strides = [1, 1]} : vector<192x1xf32> to vector<32x1xf32>
    %17 = vector.extract_strided_slice %10 {offsets = [64, 0], sizes = [32, 1], strides = [1, 1]} : vector<192x1xf32> to vector<32x1xf32>
    %18 = vector.extract_strided_slice %10 {offsets = [96, 0], sizes = [32, 1], strides = [1, 1]} : vector<192x1xf32> to vector<32x1xf32>
    %19 = vector.extract_strided_slice %10 {offsets = [128, 0], sizes = [32, 1], strides = [1, 1]} : vector<192x1xf32> to vector<32x1xf32>
    %20 = vector.extract_strided_slice %10 {offsets = [160, 0], sizes = [32, 1], strides = [1, 1]} : vector<192x1xf32> to vector<32x1xf32>
    %cst_13 = arith.constant dense<0.000000e+00> : vector<32x16xf32>
    %21 = tpu.matmul %11, %6, %cst_13 {dimension_numbers = #tpu.dot_dimension_numbers<[1], [0], [0], [1], [0, 0, 1, 1], [], []>} : vector<32x32xf32>, vector<32x16xf32>, vector<32x16xf32> -> vector<32x16xf32>
    %22 = vector.broadcast %15 : vector<32x1xf32> to vector<32x16xf32>
    %23 = arith.addf %21, %22 : vector<32x16xf32>
    %cst_14 = arith.constant dense<0.000000e+00> : vector<32x16xf32>
    %24 = tpu.matmul %12, %6, %cst_14 {dimension_numbers = #tpu.dot_dimension_numbers<[1], [0], [0], [1], [0, 0, 1, 1], [], []>} : vector<32x32xf32>, vector<32x16xf32>, vector<32x16xf32> -> vector<32x16xf32>
    %25 = vector.broadcast %16 : vector<32x1xf32> to vector<32x16xf32>
    %26 = arith.addf %24, %25 : vector<32x16xf32>
    %cst_15 = arith.constant dense<0.000000e+00> : vector<32x16xf32>
    %27 = tpu.matmul %13, %6, %cst_15 {dimension_numbers = #tpu.dot_dimension_numbers<[1], [0], [0], [1], [0, 0, 1, 1], [], []>} : vector<32x32xf32>, vector<32x16xf32>, vector<32x16xf32> -> vector<32x16xf32>
    %28 = vector.broadcast %17 : vector<32x1xf32> to vector<32x16xf32>
    %29 = arith.addf %27, %28 : vector<32x16xf32>
    %30 = vector.extract_strided_slice %23 {offsets = [0, 0], sizes = [8, 16], strides = [1, 1]} : vector<32x16xf32> to vector<8x16xf32>
    %31 = vector.extract_strided_slice %26 {offsets = [0, 0], sizes = [8, 16], strides = [1, 1]} : vector<32x16xf32> to vector<8x16xf32>
    %32 = vector.extract_strided_slice %29 {offsets = [0, 0], sizes = [8, 16], strides = [1, 1]} : vector<32x16xf32> to vector<8x16xf32>
    %33 = tpu.transpose %30, [1, 0] : vector<8x16xf32> -> vector<16x8xf32>
    %cst_16 = arith.constant dense<0.000000e+00> : vector<16x16xf32>
    %34 = tpu.matmul %33, %31, %cst_16 {dimension_numbers = #tpu.dot_dimension_numbers<[1], [0], [0], [1], [0, 0, 1, 1], [], []>} : vector<16x8xf32>, vector<8x16xf32>, vector<16x16xf32> -> vector<16x16xf32>
    %35 = arith.addf %34, %0 : vector<16x16xf32>
    %cst_17 = arith.constant dense<0xFF800000> : vector<16xf32>
    %36 = vector.multi_reduction <maximumf>, %35, %cst_17 [1] : vector<16x16xf32> to vector<16xf32>
    %37 = vector.shape_cast %36 : vector<16xf32> to vector<16x1xf32>
    %38 = vector.broadcast %37 : vector<16x1xf32> to vector<16x16xf32>
    %39 = arith.subf %35, %38 : vector<16x16xf32>
    %40 = math.exp %39 : vector<16x16xf32>
    %cst_18 = arith.constant dense<0.000000e+00> : vector<16xf32>
    %41 = vector.multi_reduction <add>, %40, %cst_18 [1] : vector<16x16xf32> to vector<16xf32>
    %42 = vector.shape_cast %41 : vector<16xf32> to vector<16x1xf32>
    %43 = tpu.reciprocal %42 {approx = true} : vector<16x1xf32> -> vector<16x1xf32>
    %44 = vector.broadcast %43 : vector<16x1xf32> to vector<16x16xf32>
    %45 = arith.mulf %40, %44 : vector<16x16xf32>
    %cst_19 = arith.constant dense<0.000000e+00> : vector<8x16xf32>
    %46 = tpu.matmul %32, %45, %cst_19 {dimension_numbers = #tpu.dot_dimension_numbers<[1], [1], [0], [0], [0, 0, 1, 0], [], []>} : vector<8x16xf32>, vector<16x16xf32>, vector<8x16xf32> -> vector<8x16xf32>
    %47 = vector.extract_strided_slice %23 {offsets = [8, 0], sizes = [8, 16], strides = [1, 1]} : vector<32x16xf32> to vector<8x16xf32>
    %48 = vector.extract_strided_slice %26 {offsets = [8, 0], sizes = [8, 16], strides = [1, 1]} : vector<32x16xf32> to vector<8x16xf32>
    %49 = vector.extract_strided_slice %29 {offsets = [8, 0], sizes = [8, 16], strides = [1, 1]} : vector<32x16xf32> to vector<8x16xf32>
    %50 = tpu.transpose %47, [1, 0] : vector<8x16xf32> -> vector<16x8xf32>
    %cst_20 = arith.constant dense<0.000000e+00> : vector<16x16xf32>
    %51 = tpu.matmul %50, %48, %cst_20 {dimension_numbers = #tpu.dot_dimension_numbers<[1], [0], [0], [1], [0, 0, 1, 1], [], []>} : vector<16x8xf32>, vector<8x16xf32>, vector<16x16xf32> -> vector<16x16xf32>
    %52 = arith.addf %51, %0 : vector<16x16xf32>
    %cst_21 = arith.constant dense<0xFF800000> : vector<16xf32>
    %53 = vector.multi_reduction <maximumf>, %52, %cst_21 [1] : vector<16x16xf32> to vector<16xf32>
    %54 = vector.shape_cast %53 : vector<16xf32> to vector<16x1xf32>
    %55 = vector.broadcast %54 : vector<16x1xf32> to vector<16x16xf32>
    %56 = arith.subf %52, %55 : vector<16x16xf32>
    %57 = math.exp %56 : vector<16x16xf32>
    %cst_22 = arith.constant dense<0.000000e+00> : vector<16xf32>
    %58 = vector.multi_reduction <add>, %57, %cst_22 [1] : vector<16x16xf32> to vector<16xf32>
    %59 = vector.shape_cast %58 : vector<16xf32> to vector<16x1xf32>
    %60 = tpu.reciprocal %59 {approx = true} : vector<16x1xf32> -> vector<16x1xf32>
    %61 = vector.broadcast %60 : vector<16x1xf32> to vector<16x16xf32>
    %62 = arith.mulf %57, %61 : vector<16x16xf32>
    %cst_23 = arith.constant dense<0.000000e+00> : vector<8x16xf32>
    %63 = tpu.matmul %49, %62, %cst_23 {dimension_numbers = #tpu.dot_dimension_numbers<[1], [1], [0], [0], [0, 0, 1, 0], [], []>} : vector<8x16xf32>, vector<16x16xf32>, vector<8x16xf32> -> vector<8x16xf32>
    %64 = vector.extract_strided_slice %23 {offsets = [16, 0], sizes = [8, 16], strides = [1, 1]} : vector<32x16xf32> to vector<8x16xf32>
    %65 = vector.extract_strided_slice %26 {offsets = [16, 0], sizes = [8, 16], strides = [1, 1]} : vector<32x16xf32> to vector<8x16xf32>
    %66 = vector.extract_strided_slice %29 {offsets = [16, 0], sizes = [8, 16], strides = [1, 1]} : vector<32x16xf32> to vector<8x16xf32>
    %67 = tpu.transpose %64, [1, 0] : vector<8x16xf32> -> vector<16x8xf32>
    %cst_24 = arith.constant dense<0.000000e+00> : vector<16x16xf32>
    %68 = tpu.matmul %67, %65, %cst_24 {dimension_numbers = #tpu.dot_dimension_numbers<[1], [0], [0], [1], [0, 0, 1, 1], [], []>} : vector<16x8xf32>, vector<8x16xf32>, vector<16x16xf32> -> vector<16x16xf32>
    %69 = arith.addf %68, %0 : vector<16x16xf32>
    %cst_25 = arith.constant dense<0xFF800000> : vector<16xf32>
    %70 = vector.multi_reduction <maximumf>, %69, %cst_25 [1] : vector<16x16xf32> to vector<16xf32>
    %71 = vector.shape_cast %70 : vector<16xf32> to vector<16x1xf32>
    %72 = vector.broadcast %71 : vector<16x1xf32> to vector<16x16xf32>
    %73 = arith.subf %69, %72 : vector<16x16xf32>
    %74 = math.exp %73 : vector<16x16xf32>
    %cst_26 = arith.constant dense<0.000000e+00> : vector<16xf32>
    %75 = vector.multi_reduction <add>, %74, %cst_26 [1] : vector<16x16xf32> to vector<16xf32>
    %76 = vector.shape_cast %75 : vector<16xf32> to vector<16x1xf32>
    %77 = tpu.reciprocal %76 {approx = true} : vector<16x1xf32> -> vector<16x1xf32>
    %78 = vector.broadcast %77 : vector<16x1xf32> to vector<16x16xf32>
    %79 = arith.mulf %74, %78 : vector<16x16xf32>
    %cst_27 = arith.constant dense<0.000000e+00> : vector<8x16xf32>
    %80 = tpu.matmul %66, %79, %cst_27 {dimension_numbers = #tpu.dot_dimension_numbers<[1], [1], [0], [0], [0, 0, 1, 0], [], []>} : vector<8x16xf32>, vector<16x16xf32>, vector<8x16xf32> -> vector<8x16xf32>
    %81 = vector.extract_strided_slice %23 {offsets = [24, 0], sizes = [8, 16], strides = [1, 1]} : vector<32x16xf32> to vector<8x16xf32>
    %82 = vector.extract_strided_slice %26 {offsets = [24, 0], sizes = [8, 16], strides = [1, 1]} : vector<32x16xf32> to vector<8x16xf32>
    %83 = vector.extract_strided_slice %29 {offsets = [24, 0], sizes = [8, 16], strides = [1, 1]} : vector<32x16xf32> to vector<8x16xf32>
    %84 = tpu.transpose %81, [1, 0] : vector<8x16xf32> -> vector<16x8xf32>
    %cst_28 = arith.constant dense<0.000000e+00> : vector<16x16xf32>
    %85 = tpu.matmul %84, %82, %cst_28 {dimension_numbers = #tpu.dot_dimension_numbers<[1], [0], [0], [1], [0, 0, 1, 1], [], []>} : vector<16x8xf32>, vector<8x16xf32>, vector<16x16xf32> -> vector<16x16xf32>
    %86 = arith.addf %85, %0 : vector<16x16xf32>
    %cst_29 = arith.constant dense<0xFF800000> : vector<16xf32>
    %87 = vector.multi_reduction <maximumf>, %86, %cst_29 [1] : vector<16x16xf32> to vector<16xf32>
    %88 = vector.shape_cast %87 : vector<16xf32> to vector<16x1xf32>
    %89 = vector.broadcast %88 : vector<16x1xf32> to vector<16x16xf32>
    %90 = arith.subf %86, %89 : vector<16x16xf32>
    %91 = math.exp %90 : vector<16x16xf32>
    %cst_30 = arith.constant dense<0.000000e+00> : vector<16xf32>
    %92 = vector.multi_reduction <add>, %91, %cst_30 [1] : vector<16x16xf32> to vector<16xf32>
    %93 = vector.shape_cast %92 : vector<16xf32> to vector<16x1xf32>
    %94 = tpu.reciprocal %93 {approx = true} : vector<16x1xf32> -> vector<16x1xf32>
    %95 = vector.broadcast %94 : vector<16x1xf32> to vector<16x16xf32>
    %96 = arith.mulf %91, %95 : vector<16x16xf32>
    %cst_31 = arith.constant dense<0.000000e+00> : vector<8x16xf32>
    %97 = tpu.matmul %83, %96, %cst_31 {dimension_numbers = #tpu.dot_dimension_numbers<[1], [1], [0], [0], [0, 0, 1, 0], [], []>} : vector<8x16xf32>, vector<16x16xf32>, vector<8x16xf32> -> vector<8x16xf32>
    %98 = tpu.concatenate %46, %63, %80, %97 in 0 : vector<8x16xf32>, vector<8x16xf32>, vector<8x16xf32>, vector<8x16xf32> -> vector<32x16xf32>
    %cst_32 = arith.constant dense<0.000000e+00> : vector<32x16xf32>
    %99 = tpu.matmul %14, %98, %cst_32 {dimension_numbers = #tpu.dot_dimension_numbers<[1], [0], [0], [1], [0, 0, 1, 1], [], []>} : vector<32x32xf32>, vector<32x16xf32>, vector<32x16xf32> -> vector<32x16xf32>
    %100 = vector.broadcast %18 : vector<32x1xf32> to vector<32x16xf32>
    %101 = arith.addf %99, %100 : vector<32x16xf32>
    %cst_33 = arith.constant dense<0.000000e+00> : vector<16xf32>
    %102 = vector.multi_reduction <add>, %101, %cst_33 [0] : vector<32x16xf32> to vector<16xf32>
    %103 = vector.shape_cast %102 : vector<16xf32> to vector<1x16xf32>
    %cst_34 = arith.constant 3.200000e+01 : f32
    %104 = vector.broadcast %cst_34 : f32 to vector<1x16xf32>
    %105 = arith.divf %103, %104 : vector<1x16xf32>
    %106 = vector.broadcast %105 : vector<1x16xf32> to vector<32x16xf32>
    %107 = arith.subf %101, %106 : vector<32x16xf32>
    %108 = arith.mulf %107, %107 : vector<32x16xf32>
    %cst_35 = arith.constant dense<0.000000e+00> : vector<16xf32>
    %109 = vector.multi_reduction <add>, %108, %cst_35 [0] : vector<32x16xf32> to vector<16xf32>
    %110 = vector.shape_cast %109 : vector<16xf32> to vector<1x16xf32>
    %cst_36 = arith.constant 3.200000e+01 : f32
    %111 = vector.broadcast %cst_36 : f32 to vector<1x16xf32>
    %112 = arith.divf %110, %111 : vector<1x16xf32>
    %113 = vector.broadcast %105 : vector<1x16xf32> to vector<32x16xf32>
    %114 = arith.subf %101, %113 : vector<32x16xf32>
    %cst_37 = arith.constant 9.99999974E-6 : f32
    %115 = vector.broadcast %cst_37 : f32 to vector<1x16xf32>
    %116 = arith.addf %112, %115 : vector<1x16xf32>
    %117 = math.rsqrt %116 : vector<1x16xf32>
    %118 = vector.broadcast %117 : vector<1x16xf32> to vector<32x16xf32>
    %119 = arith.mulf %114, %118 : vector<32x16xf32>
    %120 = vector.broadcast %19 : vector<32x1xf32> to vector<32x16xf32>
    %121 = arith.mulf %119, %120 : vector<32x16xf32>
    %122 = vector.broadcast %20 : vector<32x1xf32> to vector<32x16xf32>
    %123 = arith.addf %121, %122 : vector<32x16xf32>
    %c1 = arith.constant 1 : index
    %c0_38 = arith.constant 0 : index
    %c0_39 = arith.constant 0 : index
    %124 = vector.load %arg4[%c1, %c0_38, %c0_39] : memref<2x128x32xf32, #tpu.memory_space<vmem>>, vector<1x128x32xf32>
    %125 = vector.shape_cast %124 : vector<1x128x32xf32> to vector<128x32xf32>
    %c1_40 = arith.constant 1 : index
    %c0_41 = arith.constant 0 : index
    %c0_42 = arith.constant 0 : index
    %126 = vector.load %arg5[%c1_40, %c0_41, %c0_42] : memref<2x192x1xf32, #tpu.memory_space<vmem>>, vector<1x192x1xf32>
    %127 = vector.shape_cast %126 : vector<1x192x1xf32> to vector<192x1xf32>
    %128 = vector.extract_strided_slice %125 {offsets = [0, 0], sizes = [32, 32], strides = [1, 1]} : vector<128x32xf32> to vector<32x32xf32>
    %129 = vector.extract_strided_slice %125 {offsets = [32, 0], sizes = [32, 32], strides = [1, 1]} : vector<128x32xf32> to vector<32x32xf32>
    %130 = vector.extract_strided_slice %125 {offsets = [64, 0], sizes = [32, 32], strides = [1, 1]} : vector<128x32xf32> to vector<32x32xf32>
    %131 = vector.extract_strided_slice %125 {offsets = [96, 0], sizes = [32, 32], strides = [1, 1]} : vector<128x32xf32> to vector<32x32xf32>
    %132 = vector.extract_strided_slice %127 {offsets = [0, 0], sizes = [32, 1], strides = [1, 1]} : vector<192x1xf32> to vector<32x1xf32>
    %133 = vector.extract_strided_slice %127 {offsets = [32, 0], sizes = [32, 1], strides = [1, 1]} : vector<192x1xf32> to vector<32x1xf32>
    %134 = vector.extract_strided_slice %127 {offsets = [64, 0], sizes = [32, 1], strides = [1, 1]} : vector<192x1xf32> to vector<32x1xf32>
    %135 = vector.extract_strided_slice %127 {offsets = [96, 0], sizes = [32, 1], strides = [1, 1]} : vector<192x1xf32> to vector<32x1xf32>
    %136 = vector.extract_strided_slice %127 {offsets = [128, 0], sizes = [32, 1], strides = [1, 1]} : vector<192x1xf32> to vector<32x1xf32>
    %137 = vector.extract_strided_slice %127 {offsets = [160, 0], sizes = [32, 1], strides = [1, 1]} : vector<192x1xf32> to vector<32x1xf32>
    %cst_43 = arith.constant dense<0.000000e+00> : vector<32x16xf32>
    %138 = tpu.matmul %128, %123, %cst_43 {dimension_numbers = #tpu.dot_dimension_numbers<[1], [0], [0], [1], [0, 0, 1, 1], [], []>} : vector<32x32xf32>, vector<32x16xf32>, vector<32x16xf32> -> vector<32x16xf32>
    %139 = vector.broadcast %132 : vector<32x1xf32> to vector<32x16xf32>
    %140 = arith.addf %138, %139 : vector<32x16xf32>
    %cst_44 = arith.constant dense<0.000000e+00> : vector<32x16xf32>
    %141 = tpu.matmul %129, %123, %cst_44 {dimension_numbers = #tpu.dot_dimension_numbers<[1], [0], [0], [1], [0, 0, 1, 1], [], []>} : vector<32x32xf32>, vector<32x16xf32>, vector<32x16xf32> -> vector<32x16xf32>
    %142 = vector.broadcast %133 : vector<32x1xf32> to vector<32x16xf32>
    %143 = arith.addf %141, %142 : vector<32x16xf32>
    %cst_45 = arith.constant dense<0.000000e+00> : vector<32x16xf32>
    %144 = tpu.matmul %130, %123, %cst_45 {dimension_numbers = #tpu.dot_dimension_numbers<[1], [0], [0], [1], [0, 0, 1, 1], [], []>} : vector<32x32xf32>, vector<32x16xf32>, vector<32x16xf32> -> vector<32x16xf32>
    %145 = vector.broadcast %134 : vector<32x1xf32> to vector<32x16xf32>
    %146 = arith.addf %144, %145 : vector<32x16xf32>
    %147 = vector.extract_strided_slice %140 {offsets = [0, 0], sizes = [8, 16], strides = [1, 1]} : vector<32x16xf32> to vector<8x16xf32>
    %148 = vector.extract_strided_slice %143 {offsets = [0, 0], sizes = [8, 16], strides = [1, 1]} : vector<32x16xf32> to vector<8x16xf32>
    %149 = vector.extract_strided_slice %146 {offsets = [0, 0], sizes = [8, 16], strides = [1, 1]} : vector<32x16xf32> to vector<8x16xf32>
    %150 = tpu.transpose %147, [1, 0] : vector<8x16xf32> -> vector<16x8xf32>
    %cst_46 = arith.constant dense<0.000000e+00> : vector<16x16xf32>
    %151 = tpu.matmul %150, %148, %cst_46 {dimension_numbers = #tpu.dot_dimension_numbers<[1], [0], [0], [1], [0, 0, 1, 1], [], []>} : vector<16x8xf32>, vector<8x16xf32>, vector<16x16xf32> -> vector<16x16xf32>
    %152 = arith.addf %151, %0 : vector<16x16xf32>
    %cst_47 = arith.constant dense<0xFF800000> : vector<16xf32>
    %153 = vector.multi_reduction <maximumf>, %152, %cst_47 [1] : vector<16x16xf32> to vector<16xf32>
    %154 = vector.shape_cast %153 : vector<16xf32> to vector<16x1xf32>
    %155 = vector.broadcast %154 : vector<16x1xf32> to vector<16x16xf32>
    %156 = arith.subf %152, %155 : vector<16x16xf32>
    %157 = math.exp %156 : vector<16x16xf32>
    %cst_48 = arith.constant dense<0.000000e+00> : vector<16xf32>
    %158 = vector.multi_reduction <add>, %157, %cst_48 [1] : vector<16x16xf32> to vector<16xf32>
    %159 = vector.shape_cast %158 : vector<16xf32> to vector<16x1xf32>
    %160 = tpu.reciprocal %159 {approx = true} : vector<16x1xf32> -> vector<16x1xf32>
    %161 = vector.broadcast %160 : vector<16x1xf32> to vector<16x16xf32>
    %162 = arith.mulf %157, %161 : vector<16x16xf32>
    %cst_49 = arith.constant dense<0.000000e+00> : vector<8x16xf32>
    %163 = tpu.matmul %149, %162, %cst_49 {dimension_numbers = #tpu.dot_dimension_numbers<[1], [1], [0], [0], [0, 0, 1, 0], [], []>} : vector<8x16xf32>, vector<16x16xf32>, vector<8x16xf32> -> vector<8x16xf32>
    %164 = vector.extract_strided_slice %140 {offsets = [8, 0], sizes = [8, 16], strides = [1, 1]} : vector<32x16xf32> to vector<8x16xf32>
    %165 = vector.extract_strided_slice %143 {offsets = [8, 0], sizes = [8, 16], strides = [1, 1]} : vector<32x16xf32> to vector<8x16xf32>
    %166 = vector.extract_strided_slice %146 {offsets = [8, 0], sizes = [8, 16], strides = [1, 1]} : vector<32x16xf32> to vector<8x16xf32>
    %167 = tpu.transpose %164, [1, 0] : vector<8x16xf32> -> vector<16x8xf32>
    %cst_50 = arith.constant dense<0.000000e+00> : vector<16x16xf32>
    %168 = tpu.matmul %167, %165, %cst_50 {dimension_numbers = #tpu.dot_dimension_numbers<[1], [0], [0], [1], [0, 0, 1, 1], [], []>} : vector<16x8xf32>, vector<8x16xf32>, vector<16x16xf32> -> vector<16x16xf32>
    %169 = arith.addf %168, %0 : vector<16x16xf32>
    %cst_51 = arith.constant dense<0xFF800000> : vector<16xf32>
    %170 = vector.multi_reduction <maximumf>, %169, %cst_51 [1] : vector<16x16xf32> to vector<16xf32>
    %171 = vector.shape_cast %170 : vector<16xf32> to vector<16x1xf32>
    %172 = vector.broadcast %171 : vector<16x1xf32> to vector<16x16xf32>
    %173 = arith.subf %169, %172 : vector<16x16xf32>
    %174 = math.exp %173 : vector<16x16xf32>
    %cst_52 = arith.constant dense<0.000000e+00> : vector<16xf32>
    %175 = vector.multi_reduction <add>, %174, %cst_52 [1] : vector<16x16xf32> to vector<16xf32>
    %176 = vector.shape_cast %175 : vector<16xf32> to vector<16x1xf32>
    %177 = tpu.reciprocal %176 {approx = true} : vector<16x1xf32> -> vector<16x1xf32>
    %178 = vector.broadcast %177 : vector<16x1xf32> to vector<16x16xf32>
    %179 = arith.mulf %174, %178 : vector<16x16xf32>
    %cst_53 = arith.constant dense<0.000000e+00> : vector<8x16xf32>
    %180 = tpu.matmul %166, %179, %cst_53 {dimension_numbers = #tpu.dot_dimension_numbers<[1], [1], [0], [0], [0, 0, 1, 0], [], []>} : vector<8x16xf32>, vector<16x16xf32>, vector<8x16xf32> -> vector<8x16xf32>
    %181 = vector.extract_strided_slice %140 {offsets = [16, 0], sizes = [8, 16], strides = [1, 1]} : vector<32x16xf32> to vector<8x16xf32>
    %182 = vector.extract_strided_slice %143 {offsets = [16, 0], sizes = [8, 16], strides = [1, 1]} : vector<32x16xf32> to vector<8x16xf32>
    %183 = vector.extract_strided_slice %146 {offsets = [16, 0], sizes = [8, 16], strides = [1, 1]} : vector<32x16xf32> to vector<8x16xf32>
    %184 = tpu.transpose %181, [1, 0] : vector<8x16xf32> -> vector<16x8xf32>
    %cst_54 = arith.constant dense<0.000000e+00> : vector<16x16xf32>
    %185 = tpu.matmul %184, %182, %cst_54 {dimension_numbers = #tpu.dot_dimension_numbers<[1], [0], [0], [1], [0, 0, 1, 1], [], []>} : vector<16x8xf32>, vector<8x16xf32>, vector<16x16xf32> -> vector<16x16xf32>
    %186 = arith.addf %185, %0 : vector<16x16xf32>
    %cst_55 = arith.constant dense<0xFF800000> : vector<16xf32>
    %187 = vector.multi_reduction <maximumf>, %186, %cst_55 [1] : vector<16x16xf32> to vector<16xf32>
    %188 = vector.shape_cast %187 : vector<16xf32> to vector<16x1xf32>
    %189 = vector.broadcast %188 : vector<16x1xf32> to vector<16x16xf32>
    %190 = arith.subf %186, %189 : vector<16x16xf32>
    %191 = math.exp %190 : vector<16x16xf32>
    %cst_56 = arith.constant dense<0.000000e+00> : vector<16xf32>
    %192 = vector.multi_reduction <add>, %191, %cst_56 [1] : vector<16x16xf32> to vector<16xf32>
    %193 = vector.shape_cast %192 : vector<16xf32> to vector<16x1xf32>
    %194 = tpu.reciprocal %193 {approx = true} : vector<16x1xf32> -> vector<16x1xf32>
    %195 = vector.broadcast %194 : vector<16x1xf32> to vector<16x16xf32>
    %196 = arith.mulf %191, %195 : vector<16x16xf32>
    %cst_57 = arith.constant dense<0.000000e+00> : vector<8x16xf32>
    %197 = tpu.matmul %183, %196, %cst_57 {dimension_numbers = #tpu.dot_dimension_numbers<[1], [1], [0], [0], [0, 0, 1, 0], [], []>} : vector<8x16xf32>, vector<16x16xf32>, vector<8x16xf32> -> vector<8x16xf32>
    %198 = vector.extract_strided_slice %140 {offsets = [24, 0], sizes = [8, 16], strides = [1, 1]} : vector<32x16xf32> to vector<8x16xf32>
    %199 = vector.extract_strided_slice %143 {offsets = [24, 0], sizes = [8, 16], strides = [1, 1]} : vector<32x16xf32> to vector<8x16xf32>
    %200 = vector.extract_strided_slice %146 {offsets = [24, 0], sizes = [8, 16], strides = [1, 1]} : vector<32x16xf32> to vector<8x16xf32>
    %201 = tpu.transpose %198, [1, 0] : vector<8x16xf32> -> vector<16x8xf32>
    %cst_58 = arith.constant dense<0.000000e+00> : vector<16x16xf32>
    %202 = tpu.matmul %201, %199, %cst_58 {dimension_numbers = #tpu.dot_dimension_numbers<[1], [0], [0], [1], [0, 0, 1, 1], [], []>} : vector<16x8xf32>, vector<8x16xf32>, vector<16x16xf32> -> vector<16x16xf32>
    %203 = arith.addf %202, %0 : vector<16x16xf32>
    %cst_59 = arith.constant dense<0xFF800000> : vector<16xf32>
    %204 = vector.multi_reduction <maximumf>, %203, %cst_59 [1] : vector<16x16xf32> to vector<16xf32>
    %205 = vector.shape_cast %204 : vector<16xf32> to vector<16x1xf32>
    %206 = vector.broadcast %205 : vector<16x1xf32> to vector<16x16xf32>
    %207 = arith.subf %203, %206 : vector<16x16xf32>
    %208 = math.exp %207 : vector<16x16xf32>
    %cst_60 = arith.constant dense<0.000000e+00> : vector<16xf32>
    %209 = vector.multi_reduction <add>, %208, %cst_60 [1] : vector<16x16xf32> to vector<16xf32>
    %210 = vector.shape_cast %209 : vector<16xf32> to vector<16x1xf32>
    %211 = tpu.reciprocal %210 {approx = true} : vector<16x1xf32> -> vector<16x1xf32>
    %212 = vector.broadcast %211 : vector<16x1xf32> to vector<16x16xf32>
    %213 = arith.mulf %208, %212 : vector<16x16xf32>
    %cst_61 = arith.constant dense<0.000000e+00> : vector<8x16xf32>
    %214 = tpu.matmul %200, %213, %cst_61 {dimension_numbers = #tpu.dot_dimension_numbers<[1], [1], [0], [0], [0, 0, 1, 0], [], []>} : vector<8x16xf32>, vector<16x16xf32>, vector<8x16xf32> -> vector<8x16xf32>
    %215 = tpu.concatenate %163, %180, %197, %214 in 0 : vector<8x16xf32>, vector<8x16xf32>, vector<8x16xf32>, vector<8x16xf32> -> vector<32x16xf32>
    %cst_62 = arith.constant dense<0.000000e+00> : vector<32x16xf32>
    %216 = tpu.matmul %131, %215, %cst_62 {dimension_numbers = #tpu.dot_dimension_numbers<[1], [0], [0], [1], [0, 0, 1, 1], [], []>} : vector<32x32xf32>, vector<32x16xf32>, vector<32x16xf32> -> vector<32x16xf32>
    %217 = vector.broadcast %135 : vector<32x1xf32> to vector<32x16xf32>
    %218 = arith.addf %216, %217 : vector<32x16xf32>
    %cst_63 = arith.constant dense<0.000000e+00> : vector<16xf32>
    %219 = vector.multi_reduction <add>, %218, %cst_63 [0] : vector<32x16xf32> to vector<16xf32>
    %220 = vector.shape_cast %219 : vector<16xf32> to vector<1x16xf32>
    %cst_64 = arith.constant 3.200000e+01 : f32
    %221 = vector.broadcast %cst_64 : f32 to vector<1x16xf32>
    %222 = arith.divf %220, %221 : vector<1x16xf32>
    %223 = vector.broadcast %222 : vector<1x16xf32> to vector<32x16xf32>
    %224 = arith.subf %218, %223 : vector<32x16xf32>
    %225 = arith.mulf %224, %224 : vector<32x16xf32>
    %cst_65 = arith.constant dense<0.000000e+00> : vector<16xf32>
    %226 = vector.multi_reduction <add>, %225, %cst_65 [0] : vector<32x16xf32> to vector<16xf32>
    %227 = vector.shape_cast %226 : vector<16xf32> to vector<1x16xf32>
    %cst_66 = arith.constant 3.200000e+01 : f32
    %228 = vector.broadcast %cst_66 : f32 to vector<1x16xf32>
    %229 = arith.divf %227, %228 : vector<1x16xf32>
    %230 = vector.broadcast %222 : vector<1x16xf32> to vector<32x16xf32>
    %231 = arith.subf %218, %230 : vector<32x16xf32>
    %cst_67 = arith.constant 9.99999974E-6 : f32
    %232 = vector.broadcast %cst_67 : f32 to vector<1x16xf32>
    %233 = arith.addf %229, %232 : vector<1x16xf32>
    %234 = math.rsqrt %233 : vector<1x16xf32>
    %235 = vector.broadcast %234 : vector<1x16xf32> to vector<32x16xf32>
    %236 = arith.mulf %231, %235 : vector<32x16xf32>
    %237 = vector.broadcast %136 : vector<32x1xf32> to vector<32x16xf32>
    %238 = arith.mulf %236, %237 : vector<32x16xf32>
    %239 = vector.broadcast %137 : vector<32x1xf32> to vector<32x16xf32>
    %240 = arith.addf %238, %239 : vector<32x16xf32>
    %c0_68 = arith.constant 0 : index
    %c0_69 = arith.constant 0 : index
    %241 = vector.load %arg6[%c0_68, %c0_69] : memref<32x1xf32, #tpu.memory_space<vmem>>, vector<32x1xf32>
    %242 = vector.broadcast %241 : vector<32x1xf32> to vector<32x16xf32>
    %243 = arith.mulf %240, %242 : vector<32x16xf32>
    %cst_70 = arith.constant dense<0.000000e+00> : vector<16xf32>
    %244 = vector.multi_reduction <add>, %243, %cst_70 [0] : vector<32x16xf32> to vector<16xf32>
    %245 = vector.shape_cast %244 : vector<16xf32> to vector<1x16xf32>
    %c0_71 = arith.constant 0 : index
    %c0_72 = arith.constant 0 : index
    %246 = vector.load %arg7[%c0_71, %c0_72] : memref<1x1xf32, #tpu.memory_space<vmem>>, vector<1x1xf32>
    %247 = vector.broadcast %246 : vector<1x1xf32> to vector<1x16xf32>
    %248 = arith.addf %245, %247 : vector<1x16xf32>
    %c0_73 = arith.constant 0 : index
    %c0_74 = arith.constant 0 : index
    %249 = vector.load %arg8[%c0_73, %c0_74] : memref<1x16xf32, #tpu.memory_space<vmem>>, vector<1x16xf32>
    tpu.vector_store %arg8[%c0_73, %c0_74], %248 {strides = array<i32>} : memref<1x16xf32, #tpu.memory_space<vmem>>, vector<1x16xf32>,
    return
  }
}

</mosaic_0001>

<bundles_post_ra>
// kernel: tpu_custom_call.1
= control target key start
LH: loop header
LB: loop body
LE: loop exit
PB: predicated region body
PF: predicated region fallthrough
CT: control target
= control target key end

     0   :  { %s4261_s0 = inlined_call_operand.vmem [shape: f32[4,16], index: 0, kind: input, shape index: {}]   ;;  %s4262_s1 = inlined_call_operand.vmem [shape: f32[16,16], index: 1, kind: input, shape index: {}]   ;;  %s4263_s2 = inlined_call_operand.vmem [shape: f32[32,4], index: 2, kind: input, shape index: {}]   ;;  %s4264_s3 = inlined_call_operand.vmem [shape: f32[32,1], index: 3, kind: input, shape index: {}]   ;;  %s4265_s4 = inlined_call_operand.vmem [shape: f32[2,128,32], index: 4, kind: input, shape index: {}]   ;;  %s4266_s5 = inlined_call_operand.vmem [shape: f32[2,192,1], index: 5, kind: input, shape index: {}]   ;;  %s4267_s6 = inlined_call_operand.vmem [shape: f32[32,1], index: 6, kind: input, shape index: {}]   ;;  %s4268_s7 = inlined_call_operand.<no memory space> [shape: f32[1,1], index: 7, kind: input, shape index: {}]   ;;  %s4269_s8 = inlined_call_operand.hbm [shape: f32[1,16], index: 8, kind: output, shape index: {}]  }
   0x1   :  { %v13_v0 = vstv %s4268_s7 }
   0x2   :  { %14 = vst [vmem:[#allocation2] sm:$0x1] %v13_v0 }
   0x3   :  { %v38_v1 = vld [vmem:[%s4261_s0] sm:$0xf]  ;;  %vm76_vm0 = vcmask 1043456   ;;  %vm63_vm1 = vcmask 31744   ;;  %v35_v3 = vld [vmem:[%s4263_s2 + $0x8] sm:$0xff]  ;;  %v36_v4 = vld [vmem:[%s4263_s2 + $0x10] sm:$0xff] }
   0x4   :  { %v34_v2 = vld [vmem:[%s4263_s2] sm:$0xff]  ;;  %3381 = vmatprep.subr.msk.mxu1 %vm76_vm0, %v38_v1  ;;  %v42_v5 = vld [vmem:[%s4264_s3 + $0x18] sm:$0xff]  ;;  %v3695_v6 = vmov 0   ;;  %v40_v7 = vld [vmem:[%s4264_s3 + $0x8] sm:$0xff] }
   0x5   :  { %3383 = vmatprep.mubr.msk.f32.mxu1 %vm63_vm1, %v34_v2  ;;  %3382 = vmatpush3.msk.msra.mxu1 %vm76_vm0, %v38_v1  ;;  %v37_v8 = vld [vmem:[%s4263_s2 + $0x18] sm:$0xff]  ;;  %v41_v9 = vld [vmem:[%s4264_s3 + $0x10] sm:$0xff] }
   0x6   :  { %3601 = vset.pattern.permute.xlu0 %v3695_v6  ;;  %3384 = vmatmul.mubr.msk.f32.vlgmr.msra.gmra.mxu1 %vm63_vm1, %v35_v3 }
   0x7   :  { %60 = vperm.xlu0 %3601, %v42_v5   ;;  %3386 = vmatprep.mubr.msk.f32.mxu1 %vm63_vm1, %v36_v4 }
   0x8   :  { %3602 = vset.pattern.permute.xlu1 %v3695_v6 }
   0x9   :  { %15 = vsyncpa [#allocation4], 0  ;;  %50 = vperm.xlu1 %3602, %v40_v7   ;;  %v39_v10 = vld [vmem:[%s4264_s3] sm:$0xff]  ;;  %v182_v12 = vld [vmem:[%s4266_s5 + $0x8] sm:$0xff]  ;;  %vm225_vm2 = vcmask 261120   ;;  %vm589_vm3 = vcmask 64512  }
   0xa   :  { %3387 = vmatmul.mubr.msk.f32.gmra.mxu1 %vm63_vm1, %v37_v8  ;;  %v181_v11 = vld [vmem:[%s4266_s5] sm:$0xff]  ;;  %v186_v14 = vld [vmem:[%s4266_s5 + $0x28] sm:$0xff]  ;;  %v171_v31 = vld [vmem:[%s4265_s4 + $0x30] sm:$0xff]  ;;  %vm671_vm4 = vcmask 130048   ;;  %vm3697_vm5 = vmmov 0   ;;  %vm3131_vm6 = vcmask 122880  }
   0xb   :  { %55 = vperm.xlu0 %3601, %v41_v9   ;;  %v185_v13 = vld [vmem:[%s4266_s5 + $0x20] sm:$0xff]  ;;  %v166_v29 = vld [vmem:[%s4265_s4 + $0x8] sm:$0xff]  ;;  %v172_v32 = vld [vmem:[%s4265_s4 + $0x38] sm:$0xff] }
   0xc   :  { %v165_v15 = vld [vmem:[%s4265_s4] sm:$0xff]  ;;  %v170_v30 = vld [vmem:[%s4265_s4 + $0x28] sm:$0xff]  ;;  %v167_v45 = vld [vmem:[%s4265_s4 + $0x10] sm:$0xff] }
   0xd   :  { %45 = vperm.xlu1 %3602, %v39_v10   ;;  %v169_v16 = vld [vmem:[%s4265_s4 + $0x20] sm:$0xff]  ;;  %3397 = vmatprep.mubr.msk.f32.mxu1 %vm225_vm2, %v165_v15  ;;  %v168_v46 = vld [vmem:[%s4265_s4 + $0x18] sm:$0xff]  ;;  %v174_v48 = vld [vmem:[%s4265_s4 + $0x48] sm:$0xff] }
   0xe   :  { %3411 = vmatprep.mubr.msk.f32.mxu0 %vm225_vm2, %v169_v16  ;;  %v173_v47 = vld [vmem:[%s4265_s4 + $0x40] sm:$0xff]  ;;  %v3841_v55 = vld [vmem:[%s4262_s1 + $0x8] sm:$0xff]  ;;  %v184_v5 = vld [vmem:[%s4266_s5 + $0x18] sm:$0xff] }
   0xf   :  { %207 = vperm.xlu0 %3601, %v181_v11   ;;  %v3849_v62 = vld [vmem:[%s4262_s1] sm:$0xff]  ;;  %v190_v6 = vld [vmem:[%s4266_s5 + $0x48] sm:$0xff]  ;;  %v183_v8 = vld [vmem:[%s4266_s5 + $0x10] sm:$0xff] }
  0x10   :  { %v189_v7 = vld [vmem:[%s4266_s5 + $0x40] sm:$0xff] }
  0x11   :  { %212 = vperm.xlu1 %3602, %v182_v12  }
  0x13   :  { %325 = vperm.xlu0 %3601, %v185_v13  }
  0x15   :  { %330 = vperm.xlu1 %3602, %v186_v14  }
  0x82   :  { %v61_v17 = vpop.permute.xlu0 %60 }
  0x84   :  { %v51_v20 = vpop.permute.xlu1 %50 }
  0x86   :  { %v56_v23 = vpop.permute.xlu0 %55 }
  0x88   :  { %v46_v27 = vpop.permute.xlu1 %45 }
  0x8a   :  { %v208_v33 = vpop.permute.xlu0 %207 }
  0x8c   :  { %v213_v34 = vpop.permute.xlu1 %212 }
  0x8e   :  { %v326_v37 = vpop.permute.xlu0 %325 }
  0x90   :  { %v331_v43 = vpop.permute.xlu1 %330 }
  0xc6   :  { %v3385_v18 = vpop.f32.mrf.mxu1 }
  0xc7   :  { %v152_v26 = vadd.f32 %v3385_v18, %v51_v20 }
  0xc8   :  { %v146_v19 = vpop.f32.mrf.mxu1 }
  0xc9   :  { %v147_v28 = vadd.f32 %v146_v19, %v46_v27 }
  0xca   :  { %v3388_v21 = vpop.f32.mrf.mxu1 }
  0xcb   :  { %v162_v22 = vadd.f32 %v3388_v21, %v61_v17 }
  0xcc   :  { %v156_v24 = vpop.f32.mrf.mxu1 }
  0xcd   :  { %v157_v25 = vadd.f32 %v156_v24, %v56_v23  ;;  %3389 = vmatprep.subr.mxu1 %v162_v22  ;;  %3403 = vmatprep.subr.mxu0 %v162_v22 }
  0xce   :  { %3390 = vmatpush3.msra.mxu1 %v162_v22  ;;  %3404 = vmatpush3.msra.mxu0 %v162_v22 }
  0xcf   :  { %3391 = vmatprep.subr.mxu1 %v157_v25  ;;  %3405 = vmatprep.subr.mxu0 %v157_v25 }
  0xd0   :  { %3392 = vmatpush3.msra.mxu1 %v157_v25  ;;  %3406 = vmatpush3.msra.mxu0 %v157_v25 }
  0xd1   :  { %3393 = vmatprep.subr.mxu1 %v152_v26  ;;  %3407 = vmatprep.subr.mxu0 %v152_v26 }
  0xd2   :  { %3394 = vmatpush3.msra.mxu1 %v152_v26  ;;  %3408 = vmatpush3.msra.mxu0 %v152_v26 }
  0xd3   :  { %3395 = vmatprep.subr.mxu1 %v147_v28  ;;  %3409 = vmatprep.subr.mxu0 %v147_v28 }
  0xd4   :  { %3396 = vmatpush3.msra.mxu1 %v147_v28  ;;  %3410 = vmatpush3.msra.mxu0 %v147_v28 }
  0xd5   :  { %3398 = vmatmul.mubr.msk.f32.vlgmr.msra.gmra.mxu1 %vm225_vm2, %v166_v29  ;;  %3412 = vmatmul.mubr.msk.f32.vlgmr.msra.gmra.mxu0 %vm225_vm2, %v170_v30  ;;  %v187_v29 = vld [vmem:[%s4266_s5 + $0x30] sm:$0xff]  ;;  %v3696_v30 = vmov 0.0  }
  0xd6   :  { %3417 = vmatprep.subr.mxu1 %v162_v22  ;;  %3414 = vmatprep.mubr.msk.f32.mxu0 %vm225_vm2, %v171_v31  ;;  %v188_v31 = vld [vmem:[%s4266_s5 + $0x38] sm:$0xff] }
  0xd7   :  { %3418 = vmatpush3.msra.mxu1 %v162_v22  ;;  %3400 = vmatprep.mubr.msk.f32.mxu1 %vm225_vm2, %v167_v45 }
  0xd8   :  { %3419 = vmatprep.subr.mxu1 %v157_v25 }
  0xd9   :  { %3420 = vmatpush3.msra.mxu1 %v157_v25  ;;  %3415 = vmatmul.mubr.msk.f32.gmra.mxu0 %vm225_vm2, %v172_v32  ;;  %v175_v32 = vld [vmem:[%s4265_s4 + $0x50] sm:$0xff] }
  0xda   :  { %3421 = vmatprep.subr.mxu1 %v152_v26  ;;  %3401 = vmatmul.mubr.msk.f32.gmra.mxu1 %vm225_vm2, %v168_v46 }
  0xdb   :  { %3422 = vmatpush3.msra.mxu1 %v152_v26  ;;  %3425 = vmatprep.mubr.msk.f32.mxu1 %vm225_vm2, %v173_v47 }
  0xdc   :  { %3423 = vmatprep.subr.mxu1 %v147_v28 }
  0xdd   :  { %3424 = vmatpush3.msra.mxu1 %v147_v28 }
  0xde   :  { %3426 = vmatmul.mubr.msk.f32.vlgmr.msra.gmra.mxu1 %vm225_vm2, %v174_v48  ;;  %3436 = vmatprep.subr.mxu1 %v3696_v30 }
  0xdf   :  { %3428 = vmatprep.mubr.msk.f32.mxu1 %vm225_vm2, %v175_v32 }
 0x195   :  { %v3399_v35 = vpop.f32.mrf.mxu1  ;;  %v3413_v36 = vpop.f32.mrf.mxu0 }
 0x196   :  { %v310_v38 = vadd.f32 %v3399_v35, %v213_v34  ;;  %v427_v44 = vadd.f32 %v3413_v36, %v331_v43 }
 0x197   :  { %v304_v39 = vpop.f32.mrf.mxu1  ;;  %v421_v40 = vpop.f32.mrf.mxu0 }
 0x198   :  { %v305_v41 = vadd.f32 %v304_v39, %v208_v33  ;;  %v422_v42 = vadd.f32 %v421_v40, %v326_v37  ;;  %773 = vxpose.xlu1.b32.start.end [1/1] (short) (narrow) %v310_v38, 16  ;;  %v176_v33 = vld [vmem:[%s4265_s4 + $0x58] sm:$0xff] }
 0x199   :  { %v3834_v53 = vpop.f32.mrf.mxu0  ;;  %3429 = vmatmul.mubr.msk.f32.gmra.mxu1 %vm225_vm2, %v176_v33 }
 0x19a   :  { %3431 = vmatprep.subr.mxu0 %v422_v42  ;;  %557 = vxpose.xlu0.b32.start.end [1/1] (short) (narrow) %v305_v41, 16  ;;  %v3402_v34 = vpop.f32.mrf.mxu1 }
 0x19b   :  { %3432 = vmatpush3.msra.mxu0 %v422_v42  ;;  %v3836_v54 = vpop.f32.mrf.mxu0  ;;  %3440 = vmatprep.mubr.msk.f32.mxu1 %vm3697_vm5, %v3696_v30 }
 0x19c   :  { %3443 = vmatprep.subr.mxu0 %v427_v44  ;;  %v314_v38 = vpop.f32.mrf.mxu1 }
 0x214   :  { %v789_v50 = vpop.trf.xlu1 }
 0x216   :  { %v573_v49 = vpop.trf.xlu0 }
 0x217   :  { %3433 = vmatprep.mubr.msk.f32.mxu0 %vm589_vm3, %v573_v49 }
 0x218   :  { %v790_v52 = vpop.trf.xlu1 }
 0x21a   :  { %v574_v51 = vpop.trf.xlu0 }
 0x21b   :  { %3434 = vmatmul.mubr.msk.f32.vlgmr.msra.gmra.mxu0 %vm589_vm3, %v574_v51 }
 0x21c   :  { %3444 = vmatpush3.msra.mxu0 %v427_v44  ;;  %3445 = vmatprep.mubr.msk.f32.mxu0 %vm589_vm3, %v789_v50 }
 0x21d   :  { %3448 = vmatprep.subr.mxu0 %v3696_v30 }
 0x21f   :  { %3446 = vmatmul.mubr.msk.f32.vlgmr.msra.gmra.mxu0 %vm589_vm3, %v790_v52  ;;  %v3427_v52 = vpop.f32.mrf.mxu1 }
 0x220   :  { %3452 = vmatprep.mubr.msk.f32.mxu0 %vm3697_vm5, %v3696_v30 }
 0x2db   :  { %v3435_v56 = vpop.f32.mrf.mxu0 }
 0x2dc   :  { %v668_v57 = vadd.f32 %v3435_v56, %v3841_v55 }
 0x2dd   :  { %v662_v58 = vpop.f32.mrf.mxu0 }
 0x2de   :  { %v675_v59 = vsel %vm671_vm4, %v668_v57, -inf  ;;  %v663_v2 = vadd.f32 %v662_v58, %v3849_v62 }
 0x2df   :  { %v3447_v60 = vpop.f32.mrf.mxu0  ;;  %676 = vmax.xlane.f32.xlu1 %v675_v59 }
 0x2e0   :  { %v883_v61 = vadd.f32 %v3447_v60, %v3841_v55  ;;  %v672_v4 = vsel %vm671_vm4, %v663_v2, -inf }
 0x2e1   :  { %v877_v63 = vpop.f32.mrf.mxu0 }
 0x2e2   :  { %v878_v0 = vadd.f32 %v877_v63, %v3849_v62  ;;  %v889_v1 = vsel %vm671_vm4, %v883_v61, -inf }
 0x2e3   :  { %890 = vmax.xlane.f32.xlu0 %v889_v1 }
 0x2e4   :  { %v886_v3 = vsel %vm671_vm4, %v878_v0, -inf }
 0x2e7   :  { %887 = vmax.xlane.f32.xlu0 %v886_v3 }
 0x2eb   :  { %673 = vmax.xlane.f32.xlu0 %v672_v4 }
 0x2f0   :  { %222 = vperm.xlu1 %3602, %v184_v5  }
 0x2f4   :  { %447 = vperm.xlu1 %3602, %v190_v6  }
 0x2f8   :  { %442 = vperm.xlu1 %3602, %v189_v7  }
 0x301   :  { %217 = vperm.xlu0 %3601, %v183_v8  }
 0x368   :  { %v677_v9 = vpop.xlane.xlu1 %676 }
 0x369   :  { %v679_v10 = vsub.f32 %v668_v57, %v677_v9 }
 0x36b   :  { %v682_v11 = vmul.f32 1.442695, %v679_v10 }
 0x36c   :  { %v891_v12 = vpop.xlane.xlu0 %890  ;;  %v223_v35 = vpop.permute.xlu1 %222 }
 0x36d   :  { %3603 = vpow2.f32 %v682_v11  ;;  %v893_v13 = vsub.f32 %v883_v61, %v891_v12  ;;  %v320_v37 = vadd.f32 %v3402_v34, %v223_v35  ;;  %v538_v61 = vpop.f32.mrf.mxu1 }
 0x36f   :  { %v896_v14 = vmul.f32 1.442695, %v893_v13  ;;  %v3912_v4 = vpop.f32.mrf.mxu1 }
 0x370   :  { %v888_v15 = vpop.xlane.xlu0 %887  ;;  %v448_v40 = vpop.permute.xlu1 %447 }
 0x371   :  { %3605 = vpow2.f32 %v896_v14  ;;  %v892_v16 = vsub.f32 %v878_v0, %v888_v15  ;;  %v544_v60 = vadd.f32 %v3427_v52, %v448_v40  ;;  %v3916_v6 = vpop.f32.mrf.mxu1  ;;  %v204_v52 = vld [vmem:[%s4266_s5 + $0xb8] sm:$0xff] }
 0x373   :  { %v894_v17 = vmul.f32 1.442695, %v892_v16 }
 0x374   :  { %v674_v18 = vpop.xlane.xlu0 %673  ;;  %v443_v41 = vpop.permute.xlu1 %442 }
 0x375   :  { %3607 = vpow2.f32 %v894_v17  ;;  %v678_v19 = vsub.f32 %v663_v2, %v674_v18  ;;  %v539_v1 = vadd.f32 %v538_v61, %v443_v41  ;;  %v3204_v61 = vld [vmem:[%s4266_s5 + $0xc0] sm:$0xff] }
 0x377   :  { %v680_v20 = vmul.f32 1.442695, %v678_v19 }
 0x379   :  { %3609 = vpow2.f32 %v680_v20 }
 0x37a   :  { %v3604_v21 = vpop.eup %3603 }
 0x37b   :  { %v687_v22 = vsel %vm671_vm4, %v3604_v21, 0.0 }
 0x37c   :  { %688 = vadd.xlane.f32.xlu0 %v687_v22  ;;  %v218_v36 = vpop.permute.xlu0 %217 }
 0x37d   :  { %v315_v39 = vadd.f32 %v314_v38, %v218_v36 }
 0x37e   :  { %v3606_v23 = vpop.eup %3605 }
 0x37f   :  { %v901_v24 = vsel %vm671_vm4, %v3606_v23, 0.0 }
 0x380   :  { %902 = vadd.xlane.f32.xlu1 %v901_v24 }
 0x382   :  { %v3608_v25 = vpop.eup %3607 }
 0x383   :  { %v898_v26 = vsel %vm671_vm4, %v3608_v25, 0.0 }
 0x384   :  { %899 = vadd.xlane.f32.xlu1 %v898_v26 }
 0x386   :  { %v3610_v27 = vpop.eup %3609 }
 0x387   :  { %v684_v28 = vsel %vm671_vm4, %v3610_v27, 0.0 }
 0x388   :  { %685 = vadd.xlane.f32.xlu0 %v684_v28 }
 0x395   :  { %335 = vperm.xlu1 %3602, %v187_v29  }
 0x39e   :  { %340 = vperm.xlu0 %3601, %v188_v31  }
 0x3bc   :  { %1201 = vxpose.xlu0.b32.start.end [1/1] (short) (narrow) %v320_v37, 16 }
 0x3be   :  { %987 = vxpose.xlu1.b32.start.end [1/1] (short) (narrow) %v315_v39, 16 }
 0x405   :  { %v689_v42 = vpop.xlane.xlu0 %688 }
 0x406   :  { %3611 = vrcp.f32 %v689_v42 }
 0x409   :  { %v903_v43 = vpop.xlane.xlu1 %902 }
 0x40a   :  { %3613 = vrcp.f32 %v903_v43  ;;  %v192_v43 = vld [vmem:[%s4266_s5 + $0x58] sm:$0xff] }
 0x40d   :  { %v900_v44 = vpop.xlane.xlu1 %899 }
 0x40e   :  { %3615 = vrcp.f32 %v900_v44  ;;  %v193_v44 = vld [vmem:[%s4266_s5 + $0x60] sm:$0xff] }
 0x411   :  { %v686_v45 = vpop.xlane.xlu0 %685  ;;  %v336_v58 = vpop.permute.xlu1 %335 }
 0x412   :  { %3617 = vrcp.f32 %v686_v45  ;;  %v432_v0 = vadd.f32 %v3836_v54, %v336_v58  ;;  %v194_v45 = vld [vmem:[%s4266_s5 + $0x68] sm:$0xff]  ;;  %v201_v58 = vld [vmem:[%s4266_s5 + $0xa0] sm:$0xff] }
 0x413   :  { %v3612_v46 = vpop.eup %3611 }
 0x414   :  { %v693_v47 = vmul.f32 %v3612_v46, %v3604_v21  ;;  %v191_v46 = vld [vmem:[%s4266_s5 + $0x50] sm:$0xff] }
 0x416   :  { %3437 = vmatpush3.xpose.msk.msra.mxu1 %vm671_vm4, %v693_v47  ;;  %v196_v47 = vld [vmem:[%s4266_s5 + $0x78] sm:$0xff] }
 0x417   :  { %v3614_v48 = vpop.eup %3613  ;;  %3438 = vmatprep.subr.mxu1 %v3696_v30 }
 0x418   :  { %v907_v49 = vmul.f32 %v3614_v48, %v3606_v23  ;;  %v195_v48 = vld [vmem:[%s4266_s5 + $0x70] sm:$0xff] }
 0x419   :  { %v341_v50 = vpop.permute.xlu0 %340 }
 0x41a   :  { %3449 = vmatpush3.xpose.msk.msra.mxu0 %vm671_vm4, %v907_v49  ;;  %v437_v57 = vadd.f32 %v3834_v53, %v341_v50  ;;  %v199_v49 = vld [vmem:[%s4266_s5 + $0x90] sm:$0xff]  ;;  %v200_v50 = vld [vmem:[%s4266_s5 + $0x98] sm:$0xff] }
 0x41b   :  { %v3616_v51 = vpop.eup %3615  ;;  %3450 = vmatprep.subr.mxu0 %v3696_v30 }
 0x41c   :  { %v906_v56 = vmul.f32 %v3616_v51, %v3608_v25  ;;  %v198_v51 = vld [vmem:[%s4266_s5 + $0x88] sm:$0xff] }
 0x41e   :  { %3451 = vmatpush3.xpose.msk.msra.mxu0 %vm671_vm4, %v906_v56  ;;  %v197_v56 = vld [vmem:[%s4266_s5 + $0x80] sm:$0xff] }
 0x41f   :  { %v3618_v59 = vpop.eup %3617  ;;  %3467 = vmatprep.subr.mxu0 %v437_v57 }
 0x420   :  { %v692_v63 = vmul.f32 %v3618_v59, %v3610_v27  ;;  %v202_v59 = vld [vmem:[%s4266_s5 + $0xa8] sm:$0xff] }
 0x421   :  { %3453 = vmatmul.mubr.msk.f32.vlgmr.msra.gmra.mxu0 %vm671_vm4, %v544_v60  ;;  %v3205_v60 = vld [vmem:[%s4266_s5 + $0xc8] sm:$0xff] }
 0x422   :  { %3439 = vmatpush3.xpose.msk.msra.mxu1 %vm671_vm4, %v692_v63  ;;  %3468 = vmatpush3.msra.mxu0 %v437_v57  ;;  %v203_v57 = vld [vmem:[%s4266_s5 + $0xb0] sm:$0xff]  ;;  %v3209_v63 = vld [vmem:[%s4266_s5 + $0xe8] sm:$0xff] }
 0x423   :  { %3455 = vmatprep.subr.mxu1 %v432_v0  ;;  %3472 = vmatprep.subr.mxu0 %v3696_v30 }
 0x425   :  { %3441 = vmatmul.mubr.msk.f32.vlgmr.msra.gmra.mxu1 %vm671_vm4, %v539_v1 }
 0x426   :  { %3456 = vmatpush3.msra.mxu1 %v432_v0  ;;  %v3208_v0 = vld [vmem:[%s4266_s5 + $0xe0] sm:$0xff] }
 0x427   :  { %3460 = vmatprep.subr.mxu1 %v3696_v30 }
 0x438   :  { %v1217_v53 = vpop.trf.xlu0 }
 0x439   :  { %3469 = vmatprep.mubr.msk.f32.mxu0 %vm589_vm3, %v1217_v53 }
 0x43a   :  { %v1003_v2 = vpop.trf.xlu1 }
 0x43b   :  { %3457 = vmatprep.mubr.msk.f32.mxu1 %vm589_vm3, %v1003_v2 }
 0x43c   :  { %v1218_v54 = vpop.trf.xlu0 }
 0x43d   :  { %3470 = vmatmul.mubr.msk.f32.vlgmr.msra.gmra.mxu0 %vm589_vm3, %v1218_v54 }
 0x43e   :  { %v1004_v3 = vpop.trf.xlu1  ;;  %3476 = vmatprep.mubr.msk.f32.mxu0 %vm3697_vm5, %v3696_v30 }
 0x43f   :  { %3458 = vmatmul.mubr.msk.f32.vlgmr.msra.gmra.mxu1 %vm589_vm3, %v1004_v3 }
 0x440   :  { %3464 = vmatprep.mubr.msk.f32.mxu1 %vm3697_vm5, %v3696_v30 }
 0x4e1   :  { %v3914_v5 = vpop.f32.mrf.mxu0 }
 0x4e3   :  { %v3454_v7 = vpop.f32.mrf.mxu0 }
 0x4e5   :  { %v3918_v8 = vpop.f32.mrf.mxu1 }
 0x4e7   :  { %v3442_v9 = vpop.f32.mrf.mxu1 }
 0x4fd   :  { %v3471_v10 = vpop.f32.mrf.mxu0 }
 0x4fe   :  { %v1311_v11 = vadd.f32 %v3471_v10, %v3841_v55 }
 0x4ff   :  { %v3459_v12 = vpop.f32.mrf.mxu1  ;;  %v1305_v13 = vpop.f32.mrf.mxu0 }
 0x500   :  { %v1097_v14 = vadd.f32 %v3459_v12, %v3841_v55  ;;  %v1306_v15 = vadd.f32 %v1305_v13, %v3849_v62  ;;  %v1317_v16 = vsel %vm671_vm4, %v1311_v11, -inf }
 0x501   :  { %1318 = vmax.xlane.f32.xlu0 %v1317_v16  ;;  %v1091_v17 = vpop.f32.mrf.mxu1 }
 0x502   :  { %v1103_v18 = vsel %vm671_vm4, %v1097_v14, -inf  ;;  %v1092_v19 = vadd.f32 %v1091_v17, %v3849_v62  ;;  %v1314_v20 = vsel %vm671_vm4, %v1306_v15, -inf }
 0x503   :  { %1104 = vmax.xlane.f32.xlu1 %v1103_v18 }
 0x504   :  { %v1100_v21 = vsel %vm671_vm4, %v1092_v19, -inf }
 0x505   :  { %1315 = vmax.xlane.f32.xlu0 %v1314_v20 }
 0x509   :  { %1101 = vmax.xlane.f32.xlu0 %v1100_v21 }
 0x58a   :  { %v1319_v22 = vpop.xlane.xlu0 %1318 }
 0x58b   :  { %v1321_v23 = vsub.f32 %v1311_v11, %v1319_v22 }
 0x58c   :  { %v1105_v24 = vpop.xlane.xlu1 %1104 }
 0x58d   :  { %v1324_v25 = vmul.f32 1.442695, %v1321_v23  ;;  %v1107_v26 = vsub.f32 %v1097_v14, %v1105_v24  ;;  %v179_v23 = vld [vmem:[%s4265_s4 + $0x70] sm:$0xff]  ;;  %v3188_v24 = vld [vmem:[%s4265_s4 + $0x80] sm:$0xff] }
 0x58e   :  { %v1316_v27 = vpop.xlane.xlu0 %1315 }
 0x58f   :  { %3619 = vpow2.f32 %v1324_v25  ;;  %v1110_v28 = vmul.f32 1.442695, %v1107_v26  ;;  %v1320_v29 = vsub.f32 %v1306_v15, %v1316_v27  ;;  %v3192_v25 = vld [vmem:[%s4265_s4 + $0xa0] sm:$0xff] }
 0x591   :  { %3621 = vpow2.f32 %v1110_v28  ;;  %v1322_v31 = vmul.f32 1.442695, %v1320_v29 }
 0x592   :  { %v1102_v32 = vpop.xlane.xlu0 %1101 }
 0x593   :  { %3623 = vpow2.f32 %v1322_v31  ;;  %v1106_v33 = vsub.f32 %v1092_v19, %v1102_v32  ;;  %v177_v19 = vld [vmem:[%s4265_s4 + $0x60] sm:$0xff] }
 0x595   :  { %v1108_v34 = vmul.f32 1.442695, %v1106_v33 }
 0x597   :  { %3625 = vpow2.f32 %v1108_v34 }
 0x59c   :  { %v3620_v35 = vpop.eup %3619 }
 0x59d   :  { %v1329_v36 = vsel %vm671_vm4, %v3620_v35, 0.0 }
 0x59e   :  { %v3622_v37 = vpop.eup %3621  ;;  %1330 = vadd.xlane.f32.xlu1 %v1329_v36 }
 0x59f   :  { %v1115_v38 = vsel %vm671_vm4, %v3622_v37, 0.0 }
 0x5a0   :  { %v3624_v39 = vpop.eup %3623  ;;  %1116 = vadd.xlane.f32.xlu0 %v1115_v38 }
 0x5a1   :  { %v1326_v40 = vsel %vm671_vm4, %v3624_v39, 0.0 }
 0x5a2   :  { %1327 = vadd.xlane.f32.xlu1 %v1326_v40 }
 0x5a4   :  { %v3626_v41 = vpop.eup %3625 }
 0x5a5   :  { %v1112_v42 = vsel %vm671_vm4, %v3626_v41, 0.0 }
 0x5a6   :  { %1113 = vadd.xlane.f32.xlu0 %v1112_v42 }
 0x5b3   :  { %457 = vperm.xlu1 %3602, %v192_v43  }
 0x5b7   :  { %1417 = vperm.xlu1 %3602, %v193_v44  }
 0x5bb   :  { %1422 = vperm.xlu1 %3602, %v194_v45  }
 0x5bc   :  { %452 = vperm.xlu0 %3601, %v191_v46  }
 0x5bf   :  { %1432 = vperm.xlu1 %3602, %v196_v47  }
 0x5c0   :  { %1427 = vperm.xlu0 %3601, %v195_v48  }
 0x5c3   :  { %1587 = vperm.xlu1 %3602, %v199_v49  }
 0x5c4   :  { %1592 = vperm.xlu0 %3601, %v200_v50  }
 0x5c7   :  { %1582 = vperm.xlu1 %3602, %v198_v51  }
 0x5c8   :  { %1616 = vperm.xlu0 %3601, %v204_v52  }
 0x5cb   :  { %1577 = vperm.xlu1 %3602, %v197_v56  }
 0x5cc   :  { %1611 = vperm.xlu0 %3601, %v203_v57  }
 0x5cf   :  { %1601 = vperm.xlu1 %3602, %v201_v58  }
 0x5d0   :  { %1606 = vperm.xlu0 %3601, %v202_v59  }
 0x5d3   :  { %1672 = vperm.xlu1 %3602, %v3205_v60  }
 0x5d4   :  { %1667 = vperm.xlu0 %3601, %v3204_v61  }
 0x5d7   :  { %1789 = vperm.xlu1 %3602, %v3209_v63  }
 0x5d8   :  { %1784 = vperm.xlu0 %3601, %v3208_v0  }
 0x627   :  { %v1331_v1 = vpop.xlane.xlu1 %1330 }
 0x628   :  { %3627 = vrcp.f32 %v1331_v1 }
 0x629   :  { %v1117_v53 = vpop.xlane.xlu0 %1116 }
 0x62a   :  { %3629 = vrcp.f32 %v1117_v53 }
 0x62b   :  { %v1328_v2 = vpop.xlane.xlu1 %1327 }
 0x62c   :  { %3631 = vrcp.f32 %v1328_v2 }
 0x62f   :  { %v1114_v54 = vpop.xlane.xlu0 %1113  ;;  %v458_v12 = vpop.permute.xlu1 %457 }
 0x630   :  { %3633 = vrcp.f32 %v1114_v54  ;;  %v554_v15 = vadd.f32 %v3912_v4, %v458_v12 }
 0x635   :  { %v3628_v3 = vpop.eup %3627 }
 0x636   :  { %v1335_v7 = vmul.f32 %v3628_v3, %v3620_v35 }
 0x637   :  { %v3630_v9 = vpop.eup %3629  ;;  %v453_v16 = vpop.permute.xlu0 %452 }
 0x638   :  { %3473 = vmatpush3.xpose.msk.msra.mxu0 %vm671_vm4, %v1335_v7  ;;  %v1121_v10 = vmul.f32 %v3630_v9, %v3622_v37  ;;  %v549_v18 = vadd.f32 %v3916_v6, %v453_v16  ;;  %v178_v6 = vld [vmem:[%s4265_s4 + $0x68] sm:$0xff] }
 0x639   :  { %v3632_v11 = vpop.eup %3631  ;;  %3474 = vmatprep.subr.mxu0 %v3696_v30 }
 0x63a   :  { %3461 = vmatpush3.xpose.msk.msra.mxu1 %vm671_vm4, %v1121_v10  ;;  %v1334_v13 = vmul.f32 %v3632_v11, %v3624_v39 }
 0x63b   :  { %3462 = vmatprep.subr.mxu1 %v3696_v30  ;;  %v1428_v35 = vpop.permute.xlu0 %1427 }
 0x63c   :  { %3475 = vmatpush3.xpose.msk.msra.mxu0 %vm671_vm4, %v1334_v13 }
 0x63d   :  { %v3634_v14 = vpop.eup %3633 }
 0x63e   :  { %v1120_v17 = vmul.f32 %v3634_v14, %v3626_v41 }
 0x63f   :  { %3477 = vmatmul.mubr.msk.f32.vlgmr.msra.gmra.mxu0 %vm671_vm4, %v554_v15 }
 0x640   :  { %3463 = vmatpush3.xpose.msk.msra.mxu1 %vm671_vm4, %v1120_v17  ;;  %3501 = vmatprep.mubr.msk.f32.mxu0 %vm225_vm2, %v3188_v24  ;;  %v1593_v17 = vpop.permute.xlu0 %1592 }
 0x643   :  { %3465 = vmatmul.mubr.msk.f32.vlgmr.msra.gmra.mxu1 %vm671_vm4, %v549_v18 }
 0x644   :  { %3487 = vmatprep.mubr.msk.f32.mxu1 %vm225_vm2, %v177_v19  ;;  %v1617_v19 = vpop.permute.xlu0 %1616 }
 0x6ff   :  { %v1411_v20 = vpop.f32.mrf.mxu0 }
 0x700   :  { %3479 = vmatprep.subr.mxu1 %v1411_v20 }
 0x701   :  { %v3478_v21 = vpop.f32.mrf.mxu0  ;;  %3480 = vmatpush3.msra.mxu1 %v1411_v20 }
 0x703   :  { %v1197_v4 = vpop.f32.mrf.mxu1 }
 0x704   :  { %3481 = vmatprep.subr.mxu1 %v1197_v4 }
 0x705   :  { %v3466_v22 = vpop.f32.mrf.mxu1  ;;  %3482 = vmatpush3.msra.mxu1 %v1197_v4 }
 0x706   :  { %3483 = vmatprep.subr.mxu1 %v3914_v5 }
 0x707   :  { %3484 = vmatpush3.msra.mxu1 %v3914_v5  ;;  %v180_v5 = vld [vmem:[%s4265_s4 + $0x78] sm:$0xff] }
 0x708   :  { %3485 = vmatprep.subr.mxu1 %v3918_v8 }
 0x709   :  { %3486 = vmatpush3.msra.mxu1 %v3918_v8  ;;  %v1418_v8 = vpop.permute.xlu1 %1417 }
 0x70a   :  { %3488 = vmatmul.mubr.msk.f32.vlgmr.msra.gmra.mxu1 %vm225_vm2, %v178_v6 }
 0x70b   :  { %3490 = vmatprep.mubr.msk.f32.mxu1 %vm225_vm2, %v179_v23  ;;  %v1612_v23 = vpop.permute.xlu0 %1611 }
 0x70d   :  { %v1423_v26 = vpop.permute.xlu1 %1422 }
 0x70e   :  { %3491 = vmatmul.mubr.msk.f32.gmra.mxu1 %vm225_vm2, %v180_v5 }
 0x70f   :  { %3515 = vmatprep.mubr.msk.f32.mxu1 %vm225_vm2, %v3192_v25 }
 0x711   :  { %v1433_v33 = vpop.permute.xlu1 %1432 }
 0x715   :  { %v1588_v18 = vpop.permute.xlu1 %1587 }
 0x719   :  { %v1583_v20 = vpop.permute.xlu1 %1582 }
 0x7ca   :  { %v3489_v27 = vpop.f32.mrf.mxu1 }
 0x7cb   :  { %v1519_v29 = vadd.f32 %v3489_v27, %v1423_v26 }
 0x7cc   :  { %v1513_v28 = vpop.f32.mrf.mxu1 }
 0x7cd   :  { %v1514_v31 = vadd.f32 %v1513_v28, %v1418_v8  ;;  %v1533_v37 = vsel %vm671_vm4, %v1519_v29, 0.0  ;;  %v1578_v8 = vpop.permute.xlu1 %1577 }
 0x7ce   :  { %v3492_v32 = vpop.f32.mrf.mxu1 }
 0x7cf   :  { %v1532_v34 = vsel %vm671_vm4, %v1514_v31, 0.0  ;;  %v1529_v38 = vadd.f32 %v3492_v32, %v1433_v33 }
 0x7d0   :  { %v1523_v36 = vpop.f32.mrf.mxu1  ;;  %v1534_v40 = vadd.f32 %v1533_v37, %v1532_v34  ;;  %v3194_v37 = vld [vmem:[%s4265_s4 + $0xb0] sm:$0xff] }
 0x7d1   :  { %v1524_v39 = vadd.f32 %v1523_v36, %v1428_v35  ;;  %v1537_v43 = vsel %vm671_vm4, %v1529_v38, 0.0  ;;  %v1602_v33 = vpop.permute.xlu1 %1601  ;;  %v3189_v35 = vld [vmem:[%s4265_s4 + $0x88] sm:$0xff] }
 0x7d2   :  { %v3193_v36 = vld [vmem:[%s4265_s4 + $0xa8] sm:$0xff] }
 0x7d3   :  { %v1535_v41 = vsel %vm671_vm4, %v1524_v39, 0.0 }
 0x7d4   :  { %v1536_v42 = vadd.f32 %v1535_v41, %v1534_v40 }
 0x7d5   :  { %v1673_v40 = vpop.permute.xlu1 %1672 }
 0x7d6   :  { %v1538_v44 = vadd.f32 %v1537_v43, %v1536_v42 }
 0x7d8   :  { %v1539_v45 = vrot.slane %v1538_v44, 4 }
 0x7da   :  { %v1540_v46 = vadd.f32 %v1539_v45, %v1538_v44 }
 0x7dc   :  { %v1541_v47 = vrot.slane %v1540_v46, 2 }
 0x7de   :  { %v1542_v48 = vadd.f32 %v1541_v47, %v1540_v46 }
 0x7e0   :  { %v1543_v49 = vrot.slane %v1542_v48, 1 }
 0x7e2   :  { %v1544_v50 = vadd.f32 %v1543_v49, %v1542_v48  ;;  %v1790_v49 = vpop.permute.xlu1 %1789 }
 0x7e4   :  { %v1546_v51 = vmul.f32 0.03125, %v1544_v50 }
 0x7e6   :  { %v1547_v52 = vsub.f32 %v1514_v31, %v1546_v51  ;;  %v1548_v56 = vsub.f32 %v1519_v29, %v1546_v51  ;;  %v1549_v57 = vsub.f32 %v1524_v39, %v1546_v51  ;;  %v1550_v58 = vsub.f32 %v1529_v38, %v1546_v51  ;;  %v1607_v31 = vpop.permute.xlu0 %1606  ;;  %v3195_v38 = vld [vmem:[%s4265_s4 + $0xb8] sm:$0xff]  ;;  %v3190_v51 = vld [vmem:[%s4265_s4 + $0x90] sm:$0xff] }
 0x7e8   :  { %v1551_v59 = vmul.f32 %v1547_v52, %v1547_v52  ;;  %v1552_v60 = vmul.f32 %v1548_v56, %v1548_v56  ;;  %v1553_v61 = vmul.f32 %v1549_v57, %v1549_v57  ;;  %v1554_v63 = vmul.f32 %v1550_v58, %v1550_v58 }
 0x7ea   :  { %v1555_v0 = vsel %vm671_vm4, %v1551_v59, 0.0  ;;  %v1556_v1 = vsel %vm671_vm4, %v1552_v60, 0.0  ;;  %v1558_v2 = vsel %vm671_vm4, %v1553_v61, 0.0  ;;  %v1560_v3 = vsel %vm671_vm4, %v1554_v63, 0.0  ;;  %v1668_v39 = vpop.permute.xlu0 %1667 }
 0x7eb   :  { %v1557_v53 = vadd.f32 %v1556_v1, %v1555_v0 }
 0x7ed   :  { %v1559_v54 = vadd.f32 %v1558_v2, %v1557_v53 }
 0x7ee   :  { %v1785_v43 = vpop.permute.xlu0 %1784 }
 0x7ef   :  { %v1561_v7 = vadd.f32 %v1560_v3, %v1559_v54 }
 0x7f1   :  { %v1562_v9 = vrot.slane %v1561_v7, 4 }
 0x7f3   :  { %v1563_v10 = vadd.f32 %v1562_v9, %v1561_v7 }
 0x7f5   :  { %v1564_v11 = vrot.slane %v1563_v10, 2 }
 0x7f7   :  { %v1565_v12 = vadd.f32 %v1564_v11, %v1563_v10 }
 0x7f9   :  { %v1566_v13 = vrot.slane %v1565_v12, 1 }
 0x7fb   :  { %v1567_v14 = vadd.f32 %v1566_v13, %v1565_v12 }
 0x7fd   :  { %v1568_v15 = vmul.f32 0.03125, %v1567_v14 }
 0x7ff   :  { %v1569_v16 = vadd.f32 1e-05, %v1568_v15  ;;  %v3207_v15 = vld [vmem:[%s4266_s5 + $0xd8] sm:$0xff] }
 0x801   :  { %3635 = vrsqrt.f32 %v1569_v16  ;;  %v3206_v16 = vld [vmem:[%s4266_s5 + $0xd0] sm:$0xff] }
 0x80e   :  { %v3636_v21 = vpop.eup %3635 }
 0x80f   :  { %v1572_v4 = vmul.f32 %v3636_v21, %v1548_v56  ;;  %v1573_v22 = vmul.f32 %v3636_v21, %v1549_v57  ;;  %v1574_v6 = vmul.f32 %v3636_v21, %v1550_v58  ;;  %v1571_v5 = vmul.f32 %v3636_v21, %v1547_v52  ;;  %v3191_v52 = vld [vmem:[%s4265_s4 + $0x98] sm:$0xff]  ;;  %v3196_v56 = vld [vmem:[%s4265_s4 + $0xc0] sm:$0xff]  ;;  %v3197_v57 = vld [vmem:[%s4265_s4 + $0xc8] sm:$0xff] }
 0x811   :  { %v1597_v24 = vmul.f32 %v1588_v18, %v1573_v22  ;;  %v1598_v25 = vmul.f32 %v1593_v17, %v1574_v6  ;;  %v1596_v26 = vmul.f32 %v1583_v20, %v1572_v4  ;;  %v1595_v28 = vmul.f32 %v1578_v8, %v1571_v5 }
 0x813   :  { %v1622_v27 = vadd.f32 %v1617_v19, %v1598_v25  ;;  %v1621_v29 = vadd.f32 %v1612_v23, %v1597_v24  ;;  %v1620_v32 = vadd.f32 %v1607_v31, %v1596_v26  ;;  %v1619_v34 = vadd.f32 %v1602_v33, %v1595_v28 }
 0x815   :  { %3493 = vmatprep.subr.mxu0 %v1622_v27  ;;  %3507 = vmatprep.subr.mxu1 %v1622_v27 }
 0x816   :  { %3494 = vmatpush3.msra.mxu0 %v1622_v27  ;;  %3508 = vmatpush3.msra.mxu1 %v1622_v27 }
 0x817   :  { %3495 = vmatprep.subr.mxu0 %v1621_v29  ;;  %3509 = vmatprep.subr.mxu1 %v1621_v29 }
 0x818   :  { %3496 = vmatpush3.msra.mxu0 %v1621_v29  ;;  %3510 = vmatpush3.msra.mxu1 %v1621_v29 }
 0x819   :  { %3497 = vmatprep.subr.mxu0 %v1620_v32  ;;  %3511 = vmatprep.subr.mxu1 %v1620_v32 }
 0x81a   :  { %3498 = vmatpush3.msra.mxu0 %v1620_v32  ;;  %3512 = vmatpush3.msra.mxu1 %v1620_v32 }
 0x81b   :  { %3499 = vmatprep.subr.mxu0 %v1619_v34  ;;  %3513 = vmatprep.subr.mxu1 %v1619_v34 }
 0x81c   :  { %3500 = vmatpush3.msra.mxu0 %v1619_v34  ;;  %3514 = vmatpush3.msra.mxu1 %v1619_v34 }
 0x81d   :  { %3502 = vmatmul.mubr.msk.f32.vlgmr.msra.gmra.mxu0 %vm225_vm2, %v3189_v35  ;;  %3516 = vmatmul.mubr.msk.f32.vlgmr.msra.gmra.mxu1 %vm225_vm2, %v3193_v36  ;;  %v3211_v35 = vld [vmem:[%s4266_s5 + $0xf8] sm:$0xff]  ;;  %v3198_v36 = vld [vmem:[%s4265_s4 + $0xd0] sm:$0xff] }
 0x81e   :  { %3521 = vmatprep.subr.mxu0 %v1622_v27  ;;  %3518 = vmatprep.mubr.msk.f32.mxu1 %vm225_vm2, %v3194_v37  ;;  %v3199_v37 = vld [vmem:[%s4265_s4 + $0xd8] sm:$0xff] }
 0x81f   :  { %3522 = vmatpush3.msra.mxu0 %v1622_v27  ;;  %3504 = vmatprep.mubr.msk.f32.mxu0 %vm225_vm2, %v3190_v51 }
 0x820   :  { %3523 = vmatprep.subr.mxu0 %v1621_v29 }
 0x821   :  { %3524 = vmatpush3.msra.mxu0 %v1621_v29  ;;  %3519 = vmatmul.mubr.msk.f32.gmra.mxu1 %vm225_vm2, %v3195_v38 }
 0x822   :  { %3525 = vmatprep.subr.mxu0 %v1620_v32  ;;  %3505 = vmatmul.mubr.msk.f32.gmra.mxu0 %vm225_vm2, %v3191_v52 }
 0x823   :  { %3526 = vmatpush3.msra.mxu0 %v1620_v32  ;;  %3529 = vmatprep.mubr.msk.f32.mxu0 %vm225_vm2, %v3196_v56 }
 0x824   :  { %3527 = vmatprep.subr.mxu0 %v1619_v34 }
 0x825   :  { %3528 = vmatpush3.msra.mxu0 %v1619_v34  ;;  %v3210_v34 = vld [vmem:[%s4266_s5 + $0xf0] sm:$0xff] }
 0x826   :  { %3540 = vmatprep.subr.mxu0 %v3696_v30  ;;  %3530 = vmatmul.mubr.msk.f32.vlgmr.msra.gmra.mxu0 %vm225_vm2, %v3197_v57 }
 0x827   :  { %3532 = vmatprep.mubr.msk.f32.mxu0 %vm225_vm2, %v3198_v36 }
 0x82a   :  { %3533 = vmatmul.mubr.msk.f32.gmra.mxu0 %vm225_vm2, %v3199_v37 }
 0x82b   :  { %3544 = vmatprep.mubr.msk.f32.mxu0 %vm3697_vm5, %v3696_v30 }
 0x8dd   :  { %v3503_v41 = vpop.f32.mrf.mxu0  ;;  %v3517_v42 = vpop.f32.mrf.mxu1 }
 0x8de   :  { %v1769_v44 = vadd.f32 %v3503_v41, %v1673_v40  ;;  %v1886_v50 = vadd.f32 %v3517_v42, %v1790_v49 }
 0x8df   :  { %v1763_v45 = vpop.f32.mrf.mxu0  ;;  %v1880_v46 = vpop.f32.mrf.mxu1 }
 0x8e0   :  { %v1764_v47 = vadd.f32 %v1763_v45, %v1668_v39  ;;  %v1881_v48 = vadd.f32 %v1880_v46, %v1785_v43  ;;  %2230 = vxpose.xlu1.b32.start.end [1/1] (short) (narrow) %v1769_v44, 16 }
 0x8e1   :  { %v4072_v63 = vpop.f32.mrf.mxu1 }
 0x8e2   :  { %2016 = vxpose.xlu0.b32.start.end [1/1] (short) (narrow) %v1764_v47, 16  ;;  %3535 = vmatprep.subr.mxu1 %v1881_v48  ;;  %v3506_v38 = vpop.f32.mrf.mxu0 }
 0x8e3   :  { %3536 = vmatpush3.msra.mxu1 %v1881_v48  ;;  %v4074_v0 = vpop.f32.mrf.mxu1 }
 0x8e4   :  { %3547 = vmatprep.subr.mxu1 %v1886_v50  ;;  %v1773_v42 = vpop.f32.mrf.mxu0 }
 0x95c   :  { %v2246_v59 = vpop.trf.xlu1 }
 0x95e   :  { %v2032_v58 = vpop.trf.xlu0 }
 0x95f   :  { %3537 = vmatprep.mubr.msk.f32.mxu1 %vm589_vm3, %v2032_v58 }
 0x960   :  { %v2247_v61 = vpop.trf.xlu1 }
 0x962   :  { %v2033_v60 = vpop.trf.xlu0 }
 0x963   :  { %3538 = vmatmul.mubr.msk.f32.vlgmr.msra.gmra.mxu1 %vm589_vm3, %v2033_v60 }
 0x964   :  { %3548 = vmatpush3.msra.mxu1 %v1886_v50  ;;  %3549 = vmatprep.mubr.msk.f32.mxu1 %vm589_vm3, %v2246_v59  ;;  %v3531_v59 = vpop.f32.mrf.mxu0 }
 0x965   :  { %3552 = vmatprep.subr.mxu1 %v3696_v30 }
 0x967   :  { %3550 = vmatmul.mubr.msk.f32.vlgmr.msra.gmra.mxu1 %vm589_vm3, %v2247_v61 }
 0x968   :  { %3556 = vmatprep.mubr.msk.f32.mxu1 %vm3697_vm5, %v3696_v30 }
 0xa23   :  { %v3539_v1 = vpop.f32.mrf.mxu1 }
 0xa24   :  { %v2126_v53 = vadd.f32 %v3539_v1, %v3841_v55 }
 0xa25   :  { %v2120_v2 = vpop.f32.mrf.mxu1 }
 0xa26   :  { %v2132_v54 = vsel %vm671_vm4, %v2126_v53, -inf  ;;  %v2121_v12 = vadd.f32 %v2120_v2, %v3849_v62 }
 0xa27   :  { %2133 = vmax.xlane.f32.xlu1 %v2132_v54  ;;  %v3551_v3 = vpop.f32.mrf.mxu1  ;;  %v1997_v54 = vpop.f32.mrf.mxu0 }
 0xa28   :  { %v2340_v7 = vadd.f32 %v3551_v3, %v3841_v55  ;;  %v2129_v14 = vsel %vm671_vm4, %v2121_v12, -inf  ;;  %v3213_v55 = vld [vmem:[%s4266_s5 + $0x108] sm:$0xff] }
 0xa29   :  { %v2334_v9 = vpop.f32.mrf.mxu1 }
 0xa2a   :  { %v2335_v10 = vadd.f32 %v2334_v9, %v3849_v62  ;;  %v2346_v11 = vsel %vm671_vm4, %v2340_v7, -inf  ;;  %v3212_v62 = vld [vmem:[%s4266_s5 + $0x100] sm:$0xff] }
 0xa2b   :  { %2347 = vmax.xlane.f32.xlu0 %v2346_v11 }
 0xa2c   :  { %v2343_v13 = vsel %vm671_vm4, %v2335_v10, -inf }
 0xa2f   :  { %2344 = vmax.xlane.f32.xlu0 %v2343_v13 }
 0xa33   :  { %2130 = vmax.xlane.f32.xlu0 %v2129_v14 }
 0xa38   :  { %1682 = vperm.xlu1 %3602, %v3207_v15  }
 0xa3c   :  { %1906 = vperm.xlu1 %3602, %v3213_v55  }
 0xa40   :  { %1901 = vperm.xlu1 %3602, %v3212_v62  }
 0xa49   :  { %1677 = vperm.xlu0 %3601, %v3206_v16  }
 0xab0   :  { %v2134_v17 = vpop.xlane.xlu1 %2133 }
 0xab1   :  { %v2136_v18 = vsub.f32 %v2126_v53, %v2134_v17  ;;  %v3671_v17 = vld [vmem:[%s4262_s1 + $0x8] sm:$0xff] }
 0xab3   :  { %v2139_v19 = vmul.f32 1.442695, %v2136_v18 }
 0xab4   :  { %v2348_v20 = vpop.xlane.xlu0 %2347  ;;  %v1683_v39 = vpop.permute.xlu1 %1682 }
 0xab5   :  { %3637 = vpow2.f32 %v2139_v19  ;;  %v2350_v21 = vsub.f32 %v2340_v7, %v2348_v20  ;;  %v1779_v41 = vadd.f32 %v3506_v38, %v1683_v39 }
 0xab7   :  { %v2353_v4 = vmul.f32 1.442695, %v2350_v21 }
 0xab8   :  { %v2345_v22 = vpop.xlane.xlu0 %2344  ;;  %v1907_v44 = vpop.permute.xlu1 %1906 }
 0xab9   :  { %3639 = vpow2.f32 %v2353_v4  ;;  %v2349_v6 = vsub.f32 %v2335_v10, %v2345_v22  ;;  %v2003_v2 = vadd.f32 %v3531_v59, %v1907_v44  ;;  %v3672_v4 = vld [vmem:[%s4262_s1] sm:$0xff]  ;;  %v3222_v59 = vld [vmem:[%s4266_s5 + $0x150] sm:$0xff] }
 0xabb   :  { %v2351_v23 = vmul.f32 1.442695, %v2349_v6 }
 0xabc   :  { %v2131_v5 = vpop.xlane.xlu0 %2130  ;;  %v1902_v45 = vpop.permute.xlu1 %1901 }
 0xabd   :  { %3641 = vpow2.f32 %v2351_v23  ;;  %v2135_v24 = vsub.f32 %v2121_v12, %v2131_v5  ;;  %v1998_v9 = vadd.f32 %v1997_v54, %v1902_v45  ;;  %v4136_v12 = vpop.f32.mrf.mxu0  ;;  %v3079_v54 = vld [vmem:[%s4267_s6] sm:$0xff] }
 0xabf   :  { %v2137_v25 = vmul.f32 1.442695, %v2135_v24  ;;  %v4140_v14 = vpop.f32.mrf.mxu0 }
 0xac1   :  { %3643 = vpow2.f32 %v2137_v25 }
 0xac2   :  { %v3638_v8 = vpop.eup %3637 }
 0xac3   :  { %v2144_v26 = vsel %vm671_vm4, %v3638_v8, 0.0 }
 0xac4   :  { %2145 = vadd.xlane.f32.xlu0 %v2144_v26  ;;  %v1678_v40 = vpop.permute.xlu0 %1677 }
 0xac5   :  { %v1774_v43 = vadd.f32 %v1773_v42, %v1678_v40 }
 0xac6   :  { %v3640_v27 = vpop.eup %3639 }
 0xac7   :  { %v2358_v28 = vsel %vm671_vm4, %v3640_v27, 0.0 }
 0xac8   :  { %2359 = vadd.xlane.f32.xlu1 %v2358_v28 }
 0xaca   :  { %v3642_v29 = vpop.eup %3641 }
 0xacb   :  { %v2355_v31 = vsel %vm671_vm4, %v3642_v29, 0.0 }
 0xacc   :  { %2356 = vadd.xlane.f32.xlu1 %v2355_v31 }
 0xace   :  { %v3644_v32 = vpop.eup %3643 }
 0xacf   :  { %v2141_v33 = vsel %vm671_vm4, %v3644_v32, 0.0 }
 0xad0   :  { %2142 = vadd.xlane.f32.xlu0 %v2141_v33 }
 0xadd   :  { %1794 = vperm.xlu1 %3602, %v3210_v34  }
 0xae6   :  { %1799 = vperm.xlu0 %3601, %v3211_v35  }
 0xb04   :  { %2658 = vxpose.xlu0.b32.start.end [1/1] (short) (narrow) %v1779_v41, 16 }
 0xb06   :  { %2444 = vxpose.xlu1.b32.start.end [1/1] (short) (narrow) %v1774_v43, 16 }
 0xb4d   :  { %v2146_v46 = vpop.xlane.xlu0 %2145 }
 0xb4e   :  { %3645 = vrcp.f32 %v2146_v46 }
 0xb51   :  { %v2360_v47 = vpop.xlane.xlu1 %2359 }
 0xb52   :  { %3647 = vrcp.f32 %v2360_v47  ;;  %v3215_v47 = vld [vmem:[%s4266_s5 + $0x118] sm:$0xff] }
 0xb55   :  { %v2357_v48 = vpop.xlane.xlu1 %2356 }
 0xb56   :  { %3649 = vrcp.f32 %v2357_v48  ;;  %v3216_v48 = vld [vmem:[%s4266_s5 + $0x120] sm:$0xff] }
 0xb59   :  { %v2143_v49 = vpop.xlane.xlu0 %2142  ;;  %v1795_v1 = vpop.permute.xlu1 %1794 }
 0xb5a   :  { %3651 = vrcp.f32 %v2143_v49  ;;  %v1891_v7 = vadd.f32 %v4074_v0, %v1795_v1  ;;  %v3217_v49 = vld [vmem:[%s4266_s5 + $0x128] sm:$0xff]  ;;  %v3227_v1 = vld [vmem:[%s4266_s5 + $0x178] sm:$0xff] }
 0xb5b   :  { %v3646_v50 = vpop.eup %3645 }
 0xb5c   :  { %v2150_v51 = vmul.f32 %v3646_v50, %v3638_v8  ;;  %v3214_v50 = vld [vmem:[%s4266_s5 + $0x110] sm:$0xff] }
 0xb5e   :  { %3541 = vmatpush3.xpose.msk.msra.mxu0 %vm671_vm4, %v2150_v51  ;;  %v3219_v51 = vld [vmem:[%s4266_s5 + $0x138] sm:$0xff] }
 0xb5f   :  { %v3648_v52 = vpop.eup %3647  ;;  %3542 = vmatprep.subr.mxu0 %v3696_v30 }
 0xb60   :  { %v2364_v56 = vmul.f32 %v3648_v52, %v3640_v27  ;;  %v3218_v52 = vld [vmem:[%s4266_s5 + $0x130] sm:$0xff] }
 0xb61   :  { %v1800_v57 = vpop.permute.xlu0 %1799 }
 0xb62   :  { %3553 = vmatpush3.xpose.msk.msra.mxu1 %vm671_vm4, %v2364_v56  ;;  %v1896_v61 = vadd.f32 %v4072_v63, %v1800_v57  ;;  %v3221_v56 = vld [vmem:[%s4266_s5 + $0x148] sm:$0xff]  ;;  %v3220_v57 = vld [vmem:[%s4266_s5 + $0x140] sm:$0xff] }
 0xb63   :  { %v3650_v58 = vpop.eup %3649  ;;  %3554 = vmatprep.subr.mxu1 %v3696_v30 }
 0xb64   :  { %v2363_v60 = vmul.f32 %v3650_v58, %v3642_v29  ;;  %v3223_v58 = vld [vmem:[%s4266_s5 + $0x158] sm:$0xff] }
 0xb66   :  { %3555 = vmatpush3.xpose.msk.msra.mxu1 %vm671_vm4, %v2363_v60  ;;  %v3225_v60 = vld [vmem:[%s4266_s5 + $0x168] sm:$0xff] }
 0xb67   :  { %v3652_v53 = vpop.eup %3651  ;;  %3571 = vmatprep.subr.mxu1 %v1896_v61 }
 0xb68   :  { %v2149_v3 = vmul.f32 %v3652_v53, %v3644_v32  ;;  %v3226_v53 = vld [vmem:[%s4266_s5 + $0x170] sm:$0xff] }
 0xb69   :  { %3557 = vmatmul.mubr.msk.f32.vlgmr.msra.gmra.mxu1 %vm671_vm4, %v2003_v2  ;;  %v3080_v2 = vld [vmem:[%s4267_s6 + $0x8] sm:$0xff] }
 0xb6a   :  { %3543 = vmatpush3.xpose.msk.msra.mxu0 %vm671_vm4, %v2149_v3  ;;  %3572 = vmatpush3.msra.mxu1 %v1896_v61  ;;  %v3224_v61 = vld [vmem:[%s4266_s5 + $0x160] sm:$0xff]  ;;  %v3082_v3 = vld [vmem:[%s4267_s6 + $0x18] sm:$0xff] }
 0xb6b   :  { %3559 = vmatprep.subr.mxu0 %v1891_v7  ;;  %3576 = vmatprep.subr.mxu1 %v3696_v30 }
 0xb6d   :  { %3545 = vmatmul.mubr.msk.f32.vlgmr.msra.gmra.mxu0 %vm671_vm4, %v1998_v9  ;;  %v3120_v9 = vld [vmem:[#allocation2] sm:$0x1] }
 0xb6e   :  { %3560 = vmatpush3.msra.mxu0 %v1891_v7  ;;  %v3081_v7 = vld [vmem:[%s4267_s6 + $0x10] sm:$0xff] }
 0xb6f   :  { %3564 = vmatprep.subr.mxu0 %v3696_v30 }
 0xb80   :  { %v2674_v63 = vpop.trf.xlu0 }
 0xb81   :  { %3573 = vmatprep.mubr.msk.f32.mxu1 %vm589_vm3, %v2674_v63 }
 0xb82   :  { %v2460_v10 = vpop.trf.xlu1 }
 0xb83   :  { %3561 = vmatprep.mubr.msk.f32.mxu0 %vm589_vm3, %v2460_v10 }
 0xb84   :  { %v2675_v0 = vpop.trf.xlu0 }
 0xb85   :  { %3574 = vmatmul.mubr.msk.f32.vlgmr.msra.gmra.mxu1 %vm589_vm3, %v2675_v0 }
 0xb86   :  { %v2461_v11 = vpop.trf.xlu1  ;;  %3580 = vmatprep.mubr.msk.f32.mxu1 %vm3697_vm5, %v3696_v30 }
 0xb87   :  { %3562 = vmatmul.mubr.msk.f32.vlgmr.msra.gmra.mxu0 %vm589_vm3, %v2461_v11 }
 0xb88   :  { %3568 = vmatprep.mubr.msk.f32.mxu0 %vm3697_vm5, %v3696_v30 }
 0xc29   :  { %v4138_v13 = vpop.f32.mrf.mxu1 }
 0xc2b   :  { %v3558_v15 = vpop.f32.mrf.mxu1 }
 0xc2d   :  { %v4142_v55 = vpop.f32.mrf.mxu0 }
 0xc2f   :  { %v3546_v62 = vpop.f32.mrf.mxu0 }
 0xc45   :  { %v3575_v16 = vpop.f32.mrf.mxu1 }
 0xc46   :  { %v2768_v18 = vadd.f32 %v3671_v17, %v3575_v16 }
 0xc47   :  { %v3563_v19 = vpop.f32.mrf.mxu0  ;;  %v2762_v20 = vpop.f32.mrf.mxu1 }
 0xc48   :  { %v2554_v21 = vadd.f32 %v3671_v17, %v3563_v19  ;;  %v2763_v22 = vadd.f32 %v3672_v4, %v2762_v20  ;;  %v2774_v6 = vsel %vm671_vm4, %v2768_v18, -inf }
 0xc49   :  { %2775 = vmax.xlane.f32.xlu0 %v2774_v6  ;;  %v2548_v23 = vpop.f32.mrf.mxu0 }
 0xc4a   :  { %v2560_v5 = vsel %vm671_vm4, %v2554_v21, -inf  ;;  %v2549_v24 = vadd.f32 %v3672_v4, %v2548_v23  ;;  %v2771_v25 = vsel %vm671_vm4, %v2763_v22, -inf }
 0xc4b   :  { %2561 = vmax.xlane.f32.xlu1 %v2560_v5 }
 0xc4c   :  { %v2557_v8 = vsel %vm671_vm4, %v2549_v24, -inf }
 0xc4d   :  { %2772 = vmax.xlane.f32.xlu0 %v2771_v25 }
 0xc51   :  { %2558 = vmax.xlane.f32.xlu0 %v2557_v8  ;;  %v3202_v8 = vld [vmem:[%s4265_s4 + $0xf0] sm:$0xff] }
 0xcd2   :  { %v2776_v26 = vpop.xlane.xlu0 %2775 }
 0xcd3   :  { %v2778_v27 = vsub.f32 %v2768_v18, %v2776_v26 }
 0xcd4   :  { %v2562_v28 = vpop.xlane.xlu1 %2561 }
 0xcd5   :  { %v2781_v29 = vmul.f32 1.442695, %v2778_v27  ;;  %v2564_v31 = vsub.f32 %v2554_v21, %v2562_v28 }
 0xcd6   :  { %v2773_v32 = vpop.xlane.xlu0 %2772 }
 0xcd7   :  { %3653 = vpow2.f32 %v2781_v29  ;;  %v2567_v33 = vmul.f32 1.442695, %v2564_v31  ;;  %v2777_v34 = vsub.f32 %v2763_v22, %v2773_v32 }
 0xcd9   :  { %3655 = vpow2.f32 %v2567_v33  ;;  %v2779_v35 = vmul.f32 1.442695, %v2777_v34 }
 0xcda   :  { %v2559_v36 = vpop.xlane.xlu0 %2558 }
 0xcdb   :  { %3657 = vpow2.f32 %v2779_v35  ;;  %v2563_v37 = vsub.f32 %v2549_v24, %v2559_v36 }
 0xcdd   :  { %v2565_v38 = vmul.f32 1.442695, %v2563_v37 }
 0xcdf   :  { %3659 = vpow2.f32 %v2565_v38 }
 0xce4   :  { %v3654_v39 = vpop.eup %3653 }
 0xce5   :  { %v2786_v40 = vsel %vm671_vm4, %v3654_v39, 0.0 }
 0xce6   :  { %v3656_v41 = vpop.eup %3655  ;;  %2787 = vadd.xlane.f32.xlu1 %v2786_v40 }
 0xce7   :  { %v2572_v42 = vsel %vm671_vm4, %v3656_v41, 0.0 }
 0xce8   :  { %v3658_v43 = vpop.eup %3657  ;;  %2573 = vadd.xlane.f32.xlu0 %v2572_v42 }
 0xce9   :  { %v2783_v44 = vsel %vm671_vm4, %v3658_v43, 0.0 }
 0xcea   :  { %2784 = vadd.xlane.f32.xlu1 %v2783_v44 }
 0xcec   :  { %v4157_v45 = vpop.eup %3659 }
 0xced   :  { %v2569_v46 = vsel %vm671_vm4, %v4157_v45, 0.0 }
 0xcee   :  { %2570 = vadd.xlane.f32.xlu0 %v2569_v46 }
 0xcfb   :  { %1916 = vperm.xlu1 %3602, %v3215_v47  }
 0xcff   :  { %2874 = vperm.xlu1 %3602, %v3216_v48  }
 0xd03   :  { %2879 = vperm.xlu1 %3602, %v3217_v49  }
 0xd04   :  { %1911 = vperm.xlu0 %3601, %v3214_v50  }
 0xd07   :  { %2889 = vperm.xlu1 %3602, %v3219_v51  }
 0xd08   :  { %2884 = vperm.xlu0 %3601, %v3218_v52  }
 0xd0b   :  { %3038 = vperm.xlu1 %3602, %v3221_v56  }
 0xd0c   :  { %3033 = vperm.xlu0 %3601, %v3220_v57  }
 0xd0f   :  { %3048 = vperm.xlu1 %3602, %v3223_v58  }
 0xd10   :  { %3043 = vperm.xlu0 %3601, %v3222_v59  }
 0xd13   :  { %3062 = vperm.xlu1 %3602, %v3225_v60  }
 0xd14   :  { %3057 = vperm.xlu0 %3601, %v3224_v61  }
 0xd17   :  { %3072 = vperm.xlu1 %3602, %v3227_v1  }
 0xd18   :  { %3067 = vperm.xlu0 %3601, %v3226_v53  }
 0xd1b   :  { %3090 = vperm.xlu1 %3602, %v3080_v2  }
 0xd1c   :  { %3085 = vperm.xlu0 %3601, %v3079_v54  }
 0xd1f   :  { %3100 = vperm.xlu1 %3602, %v3082_v3  }
 0xd20   :  { %3095 = vperm.xlu0 %3601, %v3081_v7  }
 0xd24   :  { %3123 = vperm.xlu0 %3601, %v3120_v9  }
 0xd6f   :  { %v2788_v63 = vpop.xlane.xlu1 %2787 }
 0xd70   :  { %3661 = vrcp.f32 %v2788_v63 }
 0xd71   :  { %v2574_v10 = vpop.xlane.xlu0 %2573 }
 0xd72   :  { %3663 = vrcp.f32 %v2574_v10 }
 0xd73   :  { %v2785_v0 = vpop.xlane.xlu1 %2784 }
 0xd74   :  { %3665 = vrcp.f32 %v2785_v0 }
 0xd77   :  { %v2571_v11 = vpop.xlane.xlu0 %2570  ;;  %v1917_v19 = vpop.permute.xlu1 %1916 }
 0xd78   :  { %3667 = vrcp.f32 %v2571_v11  ;;  %v2013_v4 = vadd.f32 %v4136_v12, %v1917_v19 }
 0xd7b   :  { %v2875_v26 = vpop.permute.xlu1 %2874 }
 0xd7d   :  { %v3662_v15 = vpop.eup %3661 }
 0xd7e   :  { %v2792_v62 = vmul.f32 %v3662_v15, %v3654_v39 }
 0xd7f   :  { %v3664_v16 = vpop.eup %3663  ;;  %v1912_v22 = vpop.permute.xlu0 %1911 }
 0xd80   :  { %3577 = vmatpush3.xpose.msk.msra.mxu1 %vm671_vm4, %v2792_v62  ;;  %v2578_v17 = vmul.f32 %v3664_v16, %v3656_v41  ;;  %v2008_v23 = vadd.f32 %v4140_v14, %v1912_v22  ;;  %v3201_v14 = vld [vmem:[%s4265_s4 + $0xe8] sm:$0xff]  ;;  %v2880_v27 = vpop.permute.xlu1 %2879 }
 0xd81   :  { %v3666_v18 = vpop.eup %3665  ;;  %3578 = vmatprep.subr.mxu1 %v3696_v30 }
 0xd82   :  { %3565 = vmatpush3.xpose.msk.msra.mxu0 %vm671_vm4, %v2578_v17  ;;  %v2791_v20 = vmul.f32 %v3666_v18, %v3658_v43 }
 0xd83   :  { %3566 = vmatprep.subr.mxu0 %v3696_v30  ;;  %v3200_v30 = vld [vmem:[%s4265_s4 + $0xe0] sm:$0xff]  ;;  %v2885_v35 = vpop.permute.xlu0 %2884 }
 0xd84   :  { %3579 = vmatpush3.xpose.msk.msra.mxu1 %vm671_vm4, %v2791_v20  ;;  %v2890_v34 = vpop.permute.xlu1 %2889 }
 0xd85   :  { %v3668_v21 = vpop.eup %3667 }
 0xd86   :  { %v2577_v6 = vmul.f32 %v3668_v21, %v4157_v45 }
 0xd87   :  { %3581 = vmatmul.mubr.msk.f32.vlgmr.msra.gmra.mxu1 %vm671_vm4, %v2013_v4  ;;  %v3034_v15 = vpop.permute.xlu0 %3033 }
 0xd88   :  { %3567 = vmatpush3.xpose.msk.msra.mxu0 %vm671_vm4, %v2577_v6  ;;  %v3039_v16 = vpop.permute.xlu1 %3038 }
 0xd8b   :  { %3569 = vmatmul.mubr.msk.f32.vlgmr.msra.gmra.mxu0 %vm671_vm4, %v2008_v23  ;;  %v3044_v19 = vpop.permute.xlu0 %3043 }
 0xd8c   :  { %3591 = vmatprep.mubr.msk.f32.mxu0 %vm225_vm2, %v3200_v30  ;;  %v3049_v21 = vpop.permute.xlu1 %3048 }
 0xd8f   :  { %v3058_v22 = vpop.permute.xlu0 %3057 }
 0xd90   :  { %v3063_v6 = vpop.permute.xlu1 %3062 }
 0xd93   :  { %v3068_v23 = vpop.permute.xlu0 %3067 }
 0xd94   :  { %v3073_v30 = vpop.permute.xlu1 %3072 }
 0xe47   :  { %v2868_v5 = vpop.f32.mrf.mxu1 }
 0xe48   :  { %3583 = vmatprep.subr.mxu0 %v2868_v5 }
 0xe49   :  { %v3582_v12 = vpop.f32.mrf.mxu1  ;;  %3584 = vmatpush3.msra.mxu0 %v2868_v5 }
 0xe4a   :  { %v3086_v12 = vpop.permute.xlu0 %3085 }
 0xe4b   :  { %v2654_v24 = vpop.f32.mrf.mxu0 }
 0xe4c   :  { %3585 = vmatprep.subr.mxu0 %v2654_v24 }
 0xe4d   :  { %v3570_v25 = vpop.f32.mrf.mxu0  ;;  %3586 = vmatpush3.msra.mxu0 %v2654_v24 }
 0xe4e   :  { %3587 = vmatprep.subr.mxu0 %v4138_v13 }
 0xe4f   :  { %3588 = vmatpush3.msra.mxu0 %v4138_v13  ;;  %v3203_v13 = vld [vmem:[%s4265_s4 + $0xf8] sm:$0xff]  ;;  %s3698_s4 = smov [#allocation3]  }
 0xe50   :  { %3589 = vmatprep.subr.mxu0 %v4142_v55  ;;  %s3139_s14 = sshll.u32 %s3698_s4, 4  ;;  %s3140_s14 = int_to_ptr.vmem [resolvable:$true] %s3139_s14 }
 0xe51   :  { %3590 = vmatpush3.msra.mxu0 %v4142_v55  ;;  %s3673_s15 = scalar_lea.vmem %s3140_s14, 16  ;;  %s3677_s0 = scalar_lea.vmem %s3140_s14, 32 }
 0xe52   :  { %3592 = vmatmul.mubr.msk.f32.vlgmr.msra.gmra.mxu0 %vm225_vm2, %v3201_v14  ;;  %p3674_p0 = scmp.ne.s32.totalorder %s3140_s14, %s3673_s15  ;;  %p3678_p1 = scmp.lt.s32.totalorder %s3140_s14, %s3140_s14 }
 0xe53   :  { %3594 = vmatprep.mubr.msk.f32.mxu0 %vm225_vm2, %v3202_v8  ;;  %p3679_p2 = scmp.lt.s32.totalorder %s3677_s0, %s3673_s15 }
 0xe55   :  { %p3680_p3 = por %p3679_p2, %p3678_p1 }
 0xe56   :  { %3595 = vmatmul.mubr.msk.f32.gmra.mxu0 %vm225_vm2, %v3203_v13  ;;  %v3091_v13 = vpop.permute.xlu1 %3090 }
 0xe57   :  { %p3681_p4 = pnand %p3680_p3, %p3674_p0 }
 0xf12   :  { %v3593_v28 = vpop.f32.mrf.mxu0 }
 0xf13   :  { %v2976_v31 = vadd.f32 %v3593_v28, %v2880_v27 }
 0xf14   :  { %v2970_v29 = vpop.f32.mrf.mxu0 }
 0xf15   :  { %v2971_v32 = vadd.f32 %v2970_v29, %v2875_v26  ;;  %v2990_v37 = vsel %vm671_vm4, %v2976_v31, 0.0 }
 0xf16   :  { %v3596_v33 = vpop.f32.mrf.mxu0 }
 0xf17   :  { %v2989_v55 = vsel %vm671_vm4, %v2971_v32, 0.0  ;;  %v2986_v38 = vadd.f32 %v3596_v33, %v2890_v34 }
 0xf18   :  { %v2980_v36 = vpop.f32.mrf.mxu0  ;;  %v2991_v40 = vadd.f32 %v2990_v37, %v2989_v55  ;;  %v3096_v55 = vpop.permute.xlu0 %3095 }
 0xf19   :  { %v2981_v39 = vadd.f32 %v2980_v36, %v2885_v35  ;;  %v2994_v43 = vsel %vm671_vm4, %v2986_v38, 0.0 }
 0xf1b   :  { %v2992_v41 = vsel %vm671_vm4, %v2981_v39, 0.0 }
 0xf1c   :  { %v2993_v42 = vadd.f32 %v2992_v41, %v2991_v40 }
 0xf1e   :  { %v2995_v44 = vadd.f32 %v2994_v43, %v2993_v42 }
 0xf20   :  { %v2996_v45 = vrot.slane %v2995_v44, 4 }
 0xf22   :  { %v2997_v46 = vadd.f32 %v2996_v45, %v2995_v44 }
 0xf24   :  { %v2998_v47 = vrot.slane %v2997_v46, 2 }
 0xf26   :  { %v2999_v48 = vadd.f32 %v2998_v47, %v2997_v46  ;;  %v3126_v46 = vlaneseq }
 0xf28   :  { %v3000_v49 = vrot.slane %v2999_v48, 1 }
 0xf2a   :  { %v3001_v50 = vadd.f32 %v3000_v49, %v2999_v48  ;;  %v3127_v49 = vshrl.u32 %v3126_v46, 7 }
 0xf2c   :  { %v3002_v51 = vmul.f32 0.03125, %v3001_v50 }
 0xf2e   :  { %v3003_v52 = vsub.f32 %v2971_v32, %v3002_v51  ;;  %v3004_v56 = vsub.f32 %v2976_v31, %v3002_v51  ;;  %v3005_v57 = vsub.f32 %v2981_v39, %v3002_v51  ;;  %v3006_v58 = vsub.f32 %v2986_v38, %v3002_v51  ;;  %v3101_v38 = vpop.permute.xlu1 %3100 }
 0xf30   :  { %v3007_v59 = vmul.f32 %v3003_v52, %v3003_v52  ;;  %v3008_v60 = vmul.f32 %v3004_v56, %v3004_v56  ;;  %v3009_v61 = vmul.f32 %v3005_v57, %v3005_v57  ;;  %v3010_v1 = vmul.f32 %v3006_v58, %v3006_v58 }
 0xf32   :  { %v3011_v53 = vsel %vm671_vm4, %v3007_v59, 0.0  ;;  %v3012_v2 = vsel %vm671_vm4, %v3008_v60, 0.0  ;;  %v3014_v3 = vsel %vm671_vm4, %v3009_v61, 0.0  ;;  %v3016_v9 = vsel %vm671_vm4, %v3010_v1, 0.0 }
 0xf33   :  { %v3013_v54 = vadd.f32 %v3012_v2, %v3011_v53 }
 0xf35   :  { %v3015_v7 = vadd.f32 %v3014_v3, %v3013_v54 }
 0xf37   :  { %v3017_v63 = vadd.f32 %v3016_v9, %v3015_v7 }
 0xf39   :  { %v3018_v10 = vrot.slane %v3017_v63, 4 }
 0xf3b   :  { %v3019_v0 = vadd.f32 %v3018_v10, %v3017_v63 }
 0xf3d   :  { %v3020_v11 = vrot.slane %v3019_v0, 2 }
 0xf3f   :  { %v3021_v62 = vadd.f32 %v3020_v11, %v3019_v0 }
 0xf41   :  { %v3022_v17 = vrot.slane %v3021_v62, 1 }
 0xf43   :  { %v3023_v18 = vadd.f32 %v3022_v17, %v3021_v62 }
 0xf45   :  { %v3024_v20 = vmul.f32 0.03125, %v3023_v18 }
 0xf47   :  { %v3025_v4 = vadd.f32 1e-05, %v3024_v20 }
 0xf49   :  { %3669 = vrsqrt.f32 %v3025_v4 }
 0xf56   :  { %v3670_v5 = vpop.eup %3669 }
 0xf57   :  { %v3027_v24 = vmul.f32 %v3670_v5, %v3003_v52  ;;  %v3028_v25 = vmul.f32 %v3670_v5, %v3004_v56  ;;  %v3029_v14 = vmul.f32 %v3670_v5, %v3005_v57  ;;  %v3030_v8 = vmul.f32 %v3670_v5, %v3006_v58  ;;  %v3124_v57 = vpop.permute.xlu0 %3123 }
 0xf58   :  { %v3128_v52 = vsub.s32 0, %v3127_v49 }
 0xf59   :  { %v3051_v26 = vmul.f32 %v3034_v15, %v3027_v24  ;;  %v3052_v27 = vmul.f32 %v3039_v16, %v3028_v25  ;;  %v3053_v28 = vmul.f32 %v3044_v19, %v3029_v14  ;;  %v3054_v29 = vmul.f32 %v3049_v21, %v3030_v8 }
 0xf5a   :  { %v3129_v59 = vrot.slane %v3124_v57, %v3128_v52 }
 0xf5b   :  { %v3075_v31 = vadd.f32 %v3058_v22, %v3051_v26  ;;  %v3076_v32 = vadd.f32 %v3063_v6, %v3052_v27  ;;  %v3077_v33 = vadd.f32 %v3068_v23, %v3053_v28  ;;  %v3078_v34 = vadd.f32 %v3073_v30, %v3054_v29 }
 0xf5d   :  { %v3103_v35 = vmul.f32 %v3086_v12, %v3075_v31  ;;  %v3104_v36 = vmul.f32 %v3091_v13, %v3076_v32  ;;  %v3105_v37 = vmul.f32 %v3096_v55, %v3077_v33  ;;  %v3106_v41 = vmul.f32 %v3101_v38, %v3078_v34 }
 0xf5f   :  { %v3107_v39 = vsel %vm671_vm4, %v3103_v35, 0.0  ;;  %v3108_v40 = vsel %vm671_vm4, %v3104_v36, 0.0  ;;  %v3110_v43 = vsel %vm671_vm4, %v3105_v37, 0.0  ;;  %v3112_v45 = vsel %vm671_vm4, %v3106_v41, 0.0 }
 0xf60   :  { %v3109_v42 = vadd.f32 %v3108_v40, %v3107_v39 }
 0xf62   :  { %v3111_v44 = vadd.f32 %v3110_v43, %v3109_v42 }
 0xf64   :  { %v3113_v47 = vadd.f32 %v3112_v45, %v3111_v44 }
 0xf66   :  { %v3114_v48 = vrot.slane %v3113_v47, 4 }
 0xf68   :  { %v3115_v50 = vadd.f32 %v3114_v48, %v3113_v47 }
 0xf6a   :  { %v3116_v51 = vrot.slane %v3115_v50, 2 }
 0xf6c   :  { %v3117_v56 = vadd.f32 %v3116_v51, %v3115_v50 }
 0xf6e   :  { %v3118_v58 = vrot.slane %v3117_v56, 1 }
 0xf70   :  { %v3119_v60 = vadd.f32 %v3118_v58, %v3117_v56 }
 0xf72   :  { %v3130_v61 = vadd.f32 %v3129_v59, %v3119_v60 }
 0xf74   :  { %3132 = vst.msk [vmem:[#allocation3] sm:$0x1] %vm3131_vm6, %v3130_v61 }
 0xf75   :  { %3684 = shalt.err (!%p3681_p4)
}
 0xf76   :  { %3142 = dma.vmem_to_hbm [thread:$0]  %s3140_s14, 16, %s4269_s8, [#allocation4]  }
 0xf77   :  { %3693 = dma.done.wait [#allocation4], 16  }
 0xf78   :  { %3694 = vsyncadd [#allocation4], 4294967280 }
 0xf79   :  { %3146 = vsyncpa [#allocation4], 1 }

</bundles_post_ra>
